<compile_context>
chip_gen: v6e
topology: v6e:2x2x1
jax: 0.10.0
libtpu: 0.0.40
codegen_flags: <defaults>
</compile_context>

<pallas_src>
import jax
import jax.numpy as jnp
import numpy as np
from jax.experimental import pallas as pl
from jax.experimental.pallas import tpu as pltpu


def input_attention_kernel(ox_ref, wh_ref, ws_ref, vblk_ref, wih_ref, b_ref, out_ref):
    # ox_ref   : (bb, n*T)       U_e(x) per feature, lanes ordered (feature j, lag t)
    # wh_ref   : (m, GP + n*T)   [ pad(W_hh.T) | tile(W_e.T[:m], n) ]   (rows hit by h)
    # ws_ref   : (m, n*T)        tile(W_e.T[m:2m], n)                   (rows hit by s)
    # vblk_ref : (n*T, n)        block-diag of V_e rows
    # wih_ref  : (n, GP)         W_ih.T zero-padded to GP columns (gate order i,f,g,o)
    # b_ref    : (1, GP)         b_ih + b_hh zero-padded to GP columns  (f32)
    # out_ref  : (bb, T*m)       [h_0 | h_1 | ... | h_{T-1}] along lanes
    bb = ox_ref.shape[0]
    n = wih_ref.shape[0]
    nT = ox_ref.shape[1]
    T = nT // n
    m = ws_ref.shape[0]
    GP = wih_ref.shape[1]
    f32 = jnp.float32
    wd = wh_ref.dtype                      # f32 or bf16 (stationary-weight dtype)

    # ---- loop-invariant loads / broadcasts, hoisted out of the recurrence ------
    ox = ox_ref[...].astype(f32)           # (bb, n*T)
    w_h = wh_ref[...]                      # (m, GP + n*T)
    w_s = ws_ref[...]                      # (m, n*T)
    v_blk = vblk_ref[...]                  # (n*T, n)
    wih = wih_ref[...]                     # (n, GP)
    bias = jnp.broadcast_to(b_ref[...].astype(f32), (bb, GP))

    # Carried state lives in vregs for the whole (short, fully unrolled) recurrence.
    h = jnp.zeros((bb, m), f32)
    s = jnp.zeros((bb, m), f32)
    h_cols = []

    for _ in range(T):
        # State projections: gates_h = h @ W_hh.T (padded to GP), plus the tiled
        # W_e rows for h and s.  Slices below land on 128-lane tile boundaries.
        ph = jnp.dot(h.astype(wd), w_h, preferred_element_type=f32)     # (bb, GP+nT)
        attn_s = jnp.dot(s.astype(wd), w_s, preferred_element_type=f32)  # (bb, nT)
        gates_h = ph[:, :GP]                                             # (bb, GP)

        # e_t[:, j] = V_e( tanh( W_e[h;s] + U_e x_j ) )  — all j at once on lanes
        ts = jnp.tanh(ph[:, GP:] + attn_s + ox)                          # (bb, nT)
        e = jnp.dot(ts.astype(wd), v_blk, preferred_element_type=f32)    # (bb, n)

        # softmax over the n exogenous variables (tiny (bb, n) tensor -> exact div)
        e_max = jnp.max(e, axis=-1, keepdims=True)
        p = jnp.exp(e - e_max)
        alpha = p / jnp.sum(p, axis=-1, keepdims=True)
        x_tilde = alpha * e                                              # (bb, n)

        # LSTMCell gates: h@W_hh.T (already in gates_h) + x_tilde@W_ih.T + bias
        gates = gates_h + jnp.dot(x_tilde.astype(wd), wih,
                                  preferred_element_type=f32) + bias     # (bb, GP)

        sig = jax.nn.sigmoid(gates)                     # one full-width EUP slab
        g_g = jnp.tanh(gates[:, 2 * m:3 * m])           # only the g range needs tanh
        i_g = sig[:, 0:m]
        f_g = sig[:, m:2 * m]
        o_g = sig[:, 3 * m:4 * m]

        s = f_g * s + i_g * g_g
        h = o_g * jnp.tanh(s)
        h_cols.append(h)

    # Single lane-dense writeback: (bb, T*m), T*m a multiple of 128.
    out_ref[...] = jnp.concatenate(h_cols, axis=1).astype(out_ref.dtype)


def _pick_batch_block(bs, max_bb=256):
    """Largest multiple-of-8 divisor of bs (<= max_bb), preferring >= 2 grid blocks."""
    if bs <= 8:
        return bs
    candidates = [d for d in range(8, min(bs, max_bb) + 1, 8) if bs % d == 0]
    if not candidates:
        return bs
    two_plus = [d for d in candidates if bs // d >= 2]      # keep both v7x TCs busy
    return max(two_plus) if two_plus else max(candidates)


def input_attention_pallas(x, params, *, weights_dtype=jnp.float32,
                           max_bb=256, vmem_limit_bytes=48 * 1024 * 1024):
    """x: (bs, T, n) float32 -> (bs, m, T) float32 (matches the torch module)."""
    bs, T, n = x.shape
    m = params["W_hh"].shape[1]
    f32 = jnp.float32
    wd = weights_dtype
    nT = n * T
    GP = ((4 * m + 127) // 128) * 128          # gate slab padded to a lane tile

    # ---- loop-invariant U_e(x): dense per-feature matmul, done ONCE in XLA -----
    x_perm = jnp.transpose(x, (0, 2, 1)).astype(f32)                    # (bs, n, T)
    ox_wide = (x_perm @ params["U_e"].T.astype(f32)).reshape(bs, nT)    # (bs, n*T)

    # ---- host-side weight prep (layout plumbing, done once) --------------------
    we_t = params["W_e"].T.astype(f32)                                  # (2m, T)
    we_h = jnp.tile(we_t[:m], (1, n))                                   # (m, n*T)
    we_s = jnp.tile(we_t[m:], (1, n))                                   # (m, n*T)
    whh_pad = jnp.pad(params["W_hh"].T.astype(f32), ((0, 0), (0, GP - 4 * m)))
    w_h = jnp.concatenate([whh_pad, we_h], axis=1).astype(wd)           # (m, GP+n*T)
    w_s = we_s.astype(wd)                                               # (m, n*T)
    v_blk = jnp.kron(jnp.eye(n, dtype=f32),
                     params["V_e"].T.astype(f32)).astype(wd)            # (n*T, n)
    wih = jnp.pad(params["W_ih"].T.astype(f32),
                  ((0, 0), (0, GP - 4 * m))).astype(wd)                 # (n, GP)
    bias = jnp.pad((params["b_ih"] + params["b_hh"]).astype(f32),
                   (0, GP - 4 * m)).reshape(1, GP)                      # (1, GP) f32

    # ---- batch-parallel grid ----------------------------------------------------
    bb = _pick_batch_block(bs, max_bb)
    assert bs % bb == 0
    grid = (bs // bb,)

    out = pl.pallas_call(
        input_attention_kernel,
        out_shape=jax.ShapeDtypeStruct((bs, T * m), f32),
        grid=grid,
        in_specs=[
            pl.BlockSpec((bb, nT), lambda i: (i, 0)),
            pl.BlockSpec((m, GP + nT), lambda i: (0, 0)),
            pl.BlockSpec((m, nT), lambda i: (0, 0)),
            pl.BlockSpec((nT, n), lambda i: (0, 0)),
            pl.BlockSpec((n, GP), lambda i: (0, 0)),
            pl.BlockSpec((1, GP), lambda i: (0, 0)),
        ],
        out_specs=pl.BlockSpec((bb, T * m), lambda i: (i, 0)),
        compiler_params=pltpu.CompilerParams(
            dimension_semantics=("parallel",),
            vmem_limit_bytes=vmem_limit_bytes),
    )(ox_wide, w_h, w_s, v_blk, wih, bias)

    # (bs, T*m) -> (bs, T, m) -> (bs, m, T)
    return jnp.transpose(out.reshape(bs, T, m), (0, 2, 1))


def input_attention_ref(x, params):
    """Pure-JAX reference mirroring the PyTorch forward exactly."""
    bs, T, n = x.shape
    m = params["W_hh"].shape[1]
    W_e, U_e, V_e = params["W_e"], params["U_e"], params["V_e"]
    W_ih, W_hh = params["W_ih"], params["W_hh"]
    b_ih, b_hh = params["b_ih"], params["b_hh"]

    h = jnp.zeros((bs, m), jnp.float32)
    s = jnp.zeros((bs, m), jnp.float32)
    x_perm = jnp.transpose(x, (0, 2, 1))                         # (bs, n, T)
    output_x = x_perm @ U_e.T                                    # (bs, n, T)
    outs = []
    for _ in range(T):
        hs = jnp.concatenate([h, s], axis=1)
        out_hs = hs @ W_e.T                                      # (bs, T)
        tanh_sum = jnp.tanh(out_hs[:, None, :] + output_x)       # (bs, n, T)
        e_t = jnp.squeeze(tanh_sum @ V_e.T, -1)                  # (bs, n)
        alpha = jax.nn.softmax(e_t, axis=1)
        xt = alpha * e_t                                         # as in the torch code
        gates = xt @ W_ih.T + b_ih + h @ W_hh.T + b_hh
        i = jax.nn.sigmoid(gates[:, :m])
        f = jax.nn.sigmoid(gates[:, m:2 * m])
        g = jnp.tanh(gates[:, 2 * m:3 * m])
        o = jax.nn.sigmoid(gates[:, 3 * m:4 * m])
        s = f * s + i * g
        h = o * jnp.tanh(s)
        outs.append(h)
    return jnp.stack(outs, axis=-1)                              # (bs, m, T)


def init_params(key, T, n, m):
    """Deterministic synthetic parameters with the shapes the torch module declares."""
    keys = jax.random.split(key, 7)

    def u(k, shape, bound):
        return jax.random.uniform(k, shape, jnp.float32, -bound, bound)

    return dict(
        W_e=u(keys[0], (T, 2 * m), 1.0 / np.sqrt(2 * m)),   # nn.Linear(2m, T).weight
        U_e=u(keys[1], (T, T), 1.0 / np.sqrt(T)),           # nn.Linear(T, T).weight
        V_e=u(keys[2], (1, T), 1.0 / np.sqrt(T)),           # nn.Linear(T, 1).weight
        W_ih=u(keys[3], (4 * m, n), 1.0 / np.sqrt(m)),      # LSTMCell.weight_ih
        W_hh=u(keys[4], (4 * m, m), 1.0 / np.sqrt(m)),      # LSTMCell.weight_hh
        b_ih=u(keys[5], (4 * m,), 1.0 / np.sqrt(m)),        # LSTMCell.bias_ih
        b_hh=u(keys[6], (4 * m,), 1.0 / np.sqrt(m)),        # LSTMCell.bias_hh
    )


if __name__ == "__main__":
    bs, T, n, m = 2, 8, 4, 32                 # batch, lookback, exog vars, hidden
    key = jax.random.PRNGKey(0)
    kx, kp = jax.random.split(key)
    x = jax.random.normal(kx, (bs, T, n), jnp.float32)
    params = init_params(kp, T, n, m)

    ref = jax.block_until_ready(input_attention_ref(x, params))

    # f32 path — tight numerical parity with the reference.
    out = jax.block_until_ready(input_attention_pallas(x, params))
    assert out.shape == (bs, m, T), out.shape
    np.testing.assert_allclose(np.asarray(out), np.asarray(ref), rtol=3e-3, atol=3e-3)

    # bf16 stationary-weight path (production config for v6e/v7x MXU); carried
    # state and elementwise math stay f32, so drift over T steps stays small.
    out_bf16 = jax.block_until_ready(
        input_attention_pallas(x, params, weights_dtype=jnp.bfloat16))
    np.testing.assert_allclose(np.asarray(out_bf16), np.asarray(ref), rtol=1e-1, atol=1e-1)

    print("KERNEL_OK")
</pallas_src>

<mosaic_0001>
module attributes {stable_mosaic.version = 11 : i64} {
  func.func @input_attention_kernel(%arg0: i32, %arg1: memref<2x32xf32, #tpu.memory_space<vmem>>, %arg2: memref<32x160xf32, #tpu.memory_space<vmem>>, %arg3: memref<32x32xf32, #tpu.memory_space<vmem>>, %arg4: memref<32x4xf32, #tpu.memory_space<vmem>>, %arg5: memref<4x128xf32, #tpu.memory_space<vmem>>, %arg6: memref<1x128xf32, #tpu.memory_space<vmem>>, %arg7: memref<2x256xf32, #tpu.memory_space<vmem>>) attributes {dimension_semantics = [#tpu.dimension_semantics<parallel>], iteration_bounds = array<i64: 1>, scalar_prefetch = 0 : i64, scratch_operands = 0 : i64, tpu.core_type = #tpu.core_type<tc>, window_params = [{transform_indices = @transform_0, window_bounds = array<i64: 2, 32>}, {pipeline_mode = #tpu.pipeline_mode<synchronous>, transform_indices = @transform_1, window_bounds = array<i64: 32, 160>}, {pipeline_mode = #tpu.pipeline_mode<synchronous>, transform_indices = @transform_2, window_bounds = array<i64: 32, 32>}, {pipeline_mode = #tpu.pipeline_mode<synchronous>, transform_indices = @transform_3, window_bounds = array<i64: 32, 4>}, {pipeline_mode = #tpu.pipeline_mode<synchronous>, transform_indices = @transform_4, window_bounds = array<i64: 4, 128>}, {pipeline_mode = #tpu.pipeline_mode<synchronous>, transform_indices = @transform_5, window_bounds = array<i64: 1, 128>}, {transform_indices = @transform_6, window_bounds = array<i64: 2, 256>}]} {
    %c0 = arith.constant 0 : index
    %c0_0 = arith.constant 0 : index
    %0 = vector.load %arg1[%c0, %c0_0] : memref<2x32xf32, #tpu.memory_space<vmem>>, vector<2x32xf32>
    %c0_1 = arith.constant 0 : index
    %c0_2 = arith.constant 0 : index
    %1 = vector.load %arg2[%c0_1, %c0_2] : memref<32x160xf32, #tpu.memory_space<vmem>>, vector<32x160xf32>
    %c0_3 = arith.constant 0 : index
    %c0_4 = arith.constant 0 : index
    %2 = vector.load %arg3[%c0_3, %c0_4] : memref<32x32xf32, #tpu.memory_space<vmem>>, vector<32x32xf32>
    %c0_5 = arith.constant 0 : index
    %c0_6 = arith.constant 0 : index
    %3 = vector.load %arg4[%c0_5, %c0_6] : memref<32x4xf32, #tpu.memory_space<vmem>>, vector<32x4xf32>
    %c0_7 = arith.constant 0 : index
    %c0_8 = arith.constant 0 : index
    %4 = vector.load %arg5[%c0_7, %c0_8] : memref<4x128xf32, #tpu.memory_space<vmem>>, vector<4x128xf32>
    %c0_9 = arith.constant 0 : index
    %c0_10 = arith.constant 0 : index
    %5 = vector.load %arg6[%c0_9, %c0_10] : memref<1x128xf32, #tpu.memory_space<vmem>>, vector<1x128xf32>
    %6 = vector.shape_cast %5 : vector<1x128xf32> to vector<1x128xf32>
    %7 = vector.broadcast %6 : vector<1x128xf32> to vector<2x128xf32>
    %cst = arith.constant 0.000000e+00 : f32
    %8 = vector.broadcast %cst : f32 to vector<2x32xf32>
    %cst_11 = arith.constant 0.000000e+00 : f32
    %9 = vector.broadcast %cst_11 : f32 to vector<2x32xf32>
    %cst_12 = arith.constant dense<0.000000e+00> : vector<2x160xf32>
    %10 = tpu.matmul %8, %1, %cst_12 {dimension_numbers = #tpu.dot_dimension_numbers<[1], [0], [0], [1], [0, 0, 1, 1], [], []>} : vector<2x32xf32>, vector<32x160xf32>, vector<2x160xf32> -> vector<2x160xf32>
    %cst_13 = arith.constant dense<0.000000e+00> : vector<2x32xf32>
    %11 = tpu.matmul %9, %2, %cst_13 {dimension_numbers = #tpu.dot_dimension_numbers<[1], [0], [0], [1], [0, 0, 1, 1], [], []>} : vector<2x32xf32>, vector<32x32xf32>, vector<2x32xf32> -> vector<2x32xf32>
    %12 = vector.extract_strided_slice %10 {offsets = [0, 0], sizes = [2, 128], strides = [1, 1]} : vector<2x160xf32> to vector<2x128xf32>
    %13 = vector.extract_strided_slice %10 {offsets = [0, 128], sizes = [2, 32], strides = [1, 1]} : vector<2x160xf32> to vector<2x32xf32>
    %14 = arith.addf %13, %11 : vector<2x32xf32>
    %15 = arith.addf %14, %0 : vector<2x32xf32>
    %16 = math.tanh %15 : vector<2x32xf32>
    %cst_14 = arith.constant dense<0.000000e+00> : vector<2x4xf32>
    %17 = tpu.matmul %16, %3, %cst_14 {dimension_numbers = #tpu.dot_dimension_numbers<[1], [0], [0], [1], [0, 0, 1, 1], [], []>} : vector<2x32xf32>, vector<32x4xf32>, vector<2x4xf32> -> vector<2x4xf32>
    %cst_15 = arith.constant dense<0xFF800000> : vector<2xf32>
    %18 = vector.multi_reduction <maximumf>, %17, %cst_15 [1] : vector<2x4xf32> to vector<2xf32>
    %19 = vector.shape_cast %18 : vector<2xf32> to vector<2x1xf32>
    %20 = vector.broadcast %19 : vector<2x1xf32> to vector<2x4xf32>
    %21 = arith.subf %17, %20 : vector<2x4xf32>
    %22 = math.exp %21 : vector<2x4xf32>
    %cst_16 = arith.constant dense<0.000000e+00> : vector<2xf32>
    %23 = vector.multi_reduction <add>, %22, %cst_16 [1] : vector<2x4xf32> to vector<2xf32>
    %24 = vector.shape_cast %23 : vector<2xf32> to vector<2x1xf32>
    %25 = vector.broadcast %24 : vector<2x1xf32> to vector<2x4xf32>
    %26 = arith.divf %22, %25 : vector<2x4xf32>
    %27 = arith.mulf %26, %17 : vector<2x4xf32>
    %cst_17 = arith.constant dense<0.000000e+00> : vector<2x128xf32>
    %28 = tpu.matmul %27, %4, %cst_17 {dimension_numbers = #tpu.dot_dimension_numbers<[1], [0], [0], [1], [0, 0, 1, 1], [], []>} : vector<2x4xf32>, vector<4x128xf32>, vector<2x128xf32> -> vector<2x128xf32>
    %29 = arith.addf %12, %28 : vector<2x128xf32>
    %30 = arith.addf %29, %7 : vector<2x128xf32>
    %31 = arith.negf %30 : vector<2x128xf32>
    %32 = math.exp %31 : vector<2x128xf32>
    %cst_18 = arith.constant 1.000000e+00 : f32
    %33 = vector.broadcast %cst_18 : f32 to vector<2x128xf32>
    %34 = arith.addf %33, %32 : vector<2x128xf32>
    %35 = arith.divf %33, %34 : vector<2x128xf32>
    %36 = vector.extract_strided_slice %30 {offsets = [0, 64], sizes = [2, 32], strides = [1, 1]} : vector<2x128xf32> to vector<2x32xf32>
    %37 = math.tanh %36 : vector<2x32xf32>
    %38 = vector.extract_strided_slice %35 {offsets = [0, 0], sizes = [2, 32], strides = [1, 1]} : vector<2x128xf32> to vector<2x32xf32>
    %39 = vector.extract_strided_slice %35 {offsets = [0, 32], sizes = [2, 32], strides = [1, 1]} : vector<2x128xf32> to vector<2x32xf32>
    %40 = vector.extract_strided_slice %35 {offsets = [0, 96], sizes = [2, 32], strides = [1, 1]} : vector<2x128xf32> to vector<2x32xf32>
    %41 = arith.mulf %39, %9 : vector<2x32xf32>
    %42 = arith.mulf %38, %37 : vector<2x32xf32>
    %43 = arith.addf %41, %42 : vector<2x32xf32>
    %44 = math.tanh %43 : vector<2x32xf32>
    %45 = arith.mulf %40, %44 : vector<2x32xf32>
    %cst_19 = arith.constant dense<0.000000e+00> : vector<2x160xf32>
    %46 = tpu.matmul %45, %1, %cst_19 {dimension_numbers = #tpu.dot_dimension_numbers<[1], [0], [0], [1], [0, 0, 1, 1], [], []>} : vector<2x32xf32>, vector<32x160xf32>, vector<2x160xf32> -> vector<2x160xf32>
    %cst_20 = arith.constant dense<0.000000e+00> : vector<2x32xf32>
    %47 = tpu.matmul %43, %2, %cst_20 {dimension_numbers = #tpu.dot_dimension_numbers<[1], [0], [0], [1], [0, 0, 1, 1], [], []>} : vector<2x32xf32>, vector<32x32xf32>, vector<2x32xf32> -> vector<2x32xf32>
    %48 = vector.extract_strided_slice %46 {offsets = [0, 0], sizes = [2, 128], strides = [1, 1]} : vector<2x160xf32> to vector<2x128xf32>
    %49 = vector.extract_strided_slice %46 {offsets = [0, 128], sizes = [2, 32], strides = [1, 1]} : vector<2x160xf32> to vector<2x32xf32>
    %50 = arith.addf %49, %47 : vector<2x32xf32>
    %51 = arith.addf %50, %0 : vector<2x32xf32>
    %52 = math.tanh %51 : vector<2x32xf32>
    %cst_21 = arith.constant dense<0.000000e+00> : vector<2x4xf32>
    %53 = tpu.matmul %52, %3, %cst_21 {dimension_numbers = #tpu.dot_dimension_numbers<[1], [0], [0], [1], [0, 0, 1, 1], [], []>} : vector<2x32xf32>, vector<32x4xf32>, vector<2x4xf32> -> vector<2x4xf32>
    %cst_22 = arith.constant dense<0xFF800000> : vector<2xf32>
    %54 = vector.multi_reduction <maximumf>, %53, %cst_22 [1] : vector<2x4xf32> to vector<2xf32>
    %55 = vector.shape_cast %54 : vector<2xf32> to vector<2x1xf32>
    %56 = vector.broadcast %55 : vector<2x1xf32> to vector<2x4xf32>
    %57 = arith.subf %53, %56 : vector<2x4xf32>
    %58 = math.exp %57 : vector<2x4xf32>
    %cst_23 = arith.constant dense<0.000000e+00> : vector<2xf32>
    %59 = vector.multi_reduction <add>, %58, %cst_23 [1] : vector<2x4xf32> to vector<2xf32>
    %60 = vector.shape_cast %59 : vector<2xf32> to vector<2x1xf32>
    %61 = vector.broadcast %60 : vector<2x1xf32> to vector<2x4xf32>
    %62 = arith.divf %58, %61 : vector<2x4xf32>
    %63 = arith.mulf %62, %53 : vector<2x4xf32>
    %cst_24 = arith.constant dense<0.000000e+00> : vector<2x128xf32>
    %64 = tpu.matmul %63, %4, %cst_24 {dimension_numbers = #tpu.dot_dimension_numbers<[1], [0], [0], [1], [0, 0, 1, 1], [], []>} : vector<2x4xf32>, vector<4x128xf32>, vector<2x128xf32> -> vector<2x128xf32>
    %65 = arith.addf %48, %64 : vector<2x128xf32>
    %66 = arith.addf %65, %7 : vector<2x128xf32>
    %67 = arith.negf %66 : vector<2x128xf32>
    %68 = math.exp %67 : vector<2x128xf32>
    %cst_25 = arith.constant 1.000000e+00 : f32
    %69 = vector.broadcast %cst_25 : f32 to vector<2x128xf32>
    %70 = arith.addf %69, %68 : vector<2x128xf32>
    %71 = arith.divf %69, %70 : vector<2x128xf32>
    %72 = vector.extract_strided_slice %66 {offsets = [0, 64], sizes = [2, 32], strides = [1, 1]} : vector<2x128xf32> to vector<2x32xf32>
    %73 = math.tanh %72 : vector<2x32xf32>
    %74 = vector.extract_strided_slice %71 {offsets = [0, 0], sizes = [2, 32], strides = [1, 1]} : vector<2x128xf32> to vector<2x32xf32>
    %75 = vector.extract_strided_slice %71 {offsets = [0, 32], sizes = [2, 32], strides = [1, 1]} : vector<2x128xf32> to vector<2x32xf32>
    %76 = vector.extract_strided_slice %71 {offsets = [0, 96], sizes = [2, 32], strides = [1, 1]} : vector<2x128xf32> to vector<2x32xf32>
    %77 = arith.mulf %75, %43 : vector<2x32xf32>
    %78 = arith.mulf %74, %73 : vector<2x32xf32>
    %79 = arith.addf %77, %78 : vector<2x32xf32>
    %80 = math.tanh %79 : vector<2x32xf32>
    %81 = arith.mulf %76, %80 : vector<2x32xf32>
    %cst_26 = arith.constant dense<0.000000e+00> : vector<2x160xf32>
    %82 = tpu.matmul %81, %1, %cst_26 {dimension_numbers = #tpu.dot_dimension_numbers<[1], [0], [0], [1], [0, 0, 1, 1], [], []>} : vector<2x32xf32>, vector<32x160xf32>, vector<2x160xf32> -> vector<2x160xf32>
    %cst_27 = arith.constant dense<0.000000e+00> : vector<2x32xf32>
    %83 = tpu.matmul %79, %2, %cst_27 {dimension_numbers = #tpu.dot_dimension_numbers<[1], [0], [0], [1], [0, 0, 1, 1], [], []>} : vector<2x32xf32>, vector<32x32xf32>, vector<2x32xf32> -> vector<2x32xf32>
    %84 = vector.extract_strided_slice %82 {offsets = [0, 0], sizes = [2, 128], strides = [1, 1]} : vector<2x160xf32> to vector<2x128xf32>
    %85 = vector.extract_strided_slice %82 {offsets = [0, 128], sizes = [2, 32], strides = [1, 1]} : vector<2x160xf32> to vector<2x32xf32>
    %86 = arith.addf %85, %83 : vector<2x32xf32>
    %87 = arith.addf %86, %0 : vector<2x32xf32>
    %88 = math.tanh %87 : vector<2x32xf32>
    %cst_28 = arith.constant dense<0.000000e+00> : vector<2x4xf32>
    %89 = tpu.matmul %88, %3, %cst_28 {dimension_numbers = #tpu.dot_dimension_numbers<[1], [0], [0], [1], [0, 0, 1, 1], [], []>} : vector<2x32xf32>, vector<32x4xf32>, vector<2x4xf32> -> vector<2x4xf32>
    %cst_29 = arith.constant dense<0xFF800000> : vector<2xf32>
    %90 = vector.multi_reduction <maximumf>, %89, %cst_29 [1] : vector<2x4xf32> to vector<2xf32>
    %91 = vector.shape_cast %90 : vector<2xf32> to vector<2x1xf32>
    %92 = vector.broadcast %91 : vector<2x1xf32> to vector<2x4xf32>
    %93 = arith.subf %89, %92 : vector<2x4xf32>
    %94 = math.exp %93 : vector<2x4xf32>
    %cst_30 = arith.constant dense<0.000000e+00> : vector<2xf32>
    %95 = vector.multi_reduction <add>, %94, %cst_30 [1] : vector<2x4xf32> to vector<2xf32>
    %96 = vector.shape_cast %95 : vector<2xf32> to vector<2x1xf32>
    %97 = vector.broadcast %96 : vector<2x1xf32> to vector<2x4xf32>
    %98 = arith.divf %94, %97 : vector<2x4xf32>
    %99 = arith.mulf %98, %89 : vector<2x4xf32>
    %cst_31 = arith.constant dense<0.000000e+00> : vector<2x128xf32>
    %100 = tpu.matmul %99, %4, %cst_31 {dimension_numbers = #tpu.dot_dimension_numbers<[1], [0], [0], [1], [0, 0, 1, 1], [], []>} : vector<2x4xf32>, vector<4x128xf32>, vector<2x128xf32> -> vector<2x128xf32>
    %101 = arith.addf %84, %100 : vector<2x128xf32>
    %102 = arith.addf %101, %7 : vector<2x128xf32>
    %103 = arith.negf %102 : vector<2x128xf32>
    %104 = math.exp %103 : vector<2x128xf32>
    %cst_32 = arith.constant 1.000000e+00 : f32
    %105 = vector.broadcast %cst_32 : f32 to vector<2x128xf32>
    %106 = arith.addf %105, %104 : vector<2x128xf32>
    %107 = arith.divf %105, %106 : vector<2x128xf32>
    %108 = vector.extract_strided_slice %102 {offsets = [0, 64], sizes = [2, 32], strides = [1, 1]} : vector<2x128xf32> to vector<2x32xf32>
    %109 = math.tanh %108 : vector<2x32xf32>
    %110 = vector.extract_strided_slice %107 {offsets = [0, 0], sizes = [2, 32], strides = [1, 1]} : vector<2x128xf32> to vector<2x32xf32>
    %111 = vector.extract_strided_slice %107 {offsets = [0, 32], sizes = [2, 32], strides = [1, 1]} : vector<2x128xf32> to vector<2x32xf32>
    %112 = vector.extract_strided_slice %107 {offsets = [0, 96], sizes = [2, 32], strides = [1, 1]} : vector<2x128xf32> to vector<2x32xf32>
    %113 = arith.mulf %111, %79 : vector<2x32xf32>
    %114 = arith.mulf %110, %109 : vector<2x32xf32>
    %115 = arith.addf %113, %114 : vector<2x32xf32>
    %116 = math.tanh %115 : vector<2x32xf32>
    %117 = arith.mulf %112, %116 : vector<2x32xf32>
    %cst_33 = arith.constant dense<0.000000e+00> : vector<2x160xf32>
    %118 = tpu.matmul %117, %1, %cst_33 {dimension_numbers = #tpu.dot_dimension_numbers<[1], [0], [0], [1], [0, 0, 1, 1], [], []>} : vector<2x32xf32>, vector<32x160xf32>, vector<2x160xf32> -> vector<2x160xf32>
    %cst_34 = arith.constant dense<0.000000e+00> : vector<2x32xf32>
    %119 = tpu.matmul %115, %2, %cst_34 {dimension_numbers = #tpu.dot_dimension_numbers<[1], [0], [0], [1], [0, 0, 1, 1], [], []>} : vector<2x32xf32>, vector<32x32xf32>, vector<2x32xf32> -> vector<2x32xf32>
    %120 = vector.extract_strided_slice %118 {offsets = [0, 0], sizes = [2, 128], strides = [1, 1]} : vector<2x160xf32> to vector<2x128xf32>
    %121 = vector.extract_strided_slice %118 {offsets = [0, 128], sizes = [2, 32], strides = [1, 1]} : vector<2x160xf32> to vector<2x32xf32>
    %122 = arith.addf %121, %119 : vector<2x32xf32>
    %123 = arith.addf %122, %0 : vector<2x32xf32>
    %124 = math.tanh %123 : vector<2x32xf32>
    %cst_35 = arith.constant dense<0.000000e+00> : vector<2x4xf32>
    %125 = tpu.matmul %124, %3, %cst_35 {dimension_numbers = #tpu.dot_dimension_numbers<[1], [0], [0], [1], [0, 0, 1, 1], [], []>} : vector<2x32xf32>, vector<32x4xf32>, vector<2x4xf32> -> vector<2x4xf32>
    %cst_36 = arith.constant dense<0xFF800000> : vector<2xf32>
    %126 = vector.multi_reduction <maximumf>, %125, %cst_36 [1] : vector<2x4xf32> to vector<2xf32>
    %127 = vector.shape_cast %126 : vector<2xf32> to vector<2x1xf32>
    %128 = vector.broadcast %127 : vector<2x1xf32> to vector<2x4xf32>
    %129 = arith.subf %125, %128 : vector<2x4xf32>
    %130 = math.exp %129 : vector<2x4xf32>
    %cst_37 = arith.constant dense<0.000000e+00> : vector<2xf32>
    %131 = vector.multi_reduction <add>, %130, %cst_37 [1] : vector<2x4xf32> to vector<2xf32>
    %132 = vector.shape_cast %131 : vector<2xf32> to vector<2x1xf32>
    %133 = vector.broadcast %132 : vector<2x1xf32> to vector<2x4xf32>
    %134 = arith.divf %130, %133 : vector<2x4xf32>
    %135 = arith.mulf %134, %125 : vector<2x4xf32>
    %cst_38 = arith.constant dense<0.000000e+00> : vector<2x128xf32>
    %136 = tpu.matmul %135, %4, %cst_38 {dimension_numbers = #tpu.dot_dimension_numbers<[1], [0], [0], [1], [0, 0, 1, 1], [], []>} : vector<2x4xf32>, vector<4x128xf32>, vector<2x128xf32> -> vector<2x128xf32>
    %137 = arith.addf %120, %136 : vector<2x128xf32>
    %138 = arith.addf %137, %7 : vector<2x128xf32>
    %139 = arith.negf %138 : vector<2x128xf32>
    %140 = math.exp %139 : vector<2x128xf32>
    %cst_39 = arith.constant 1.000000e+00 : f32
    %141 = vector.broadcast %cst_39 : f32 to vector<2x128xf32>
    %142 = arith.addf %141, %140 : vector<2x128xf32>
    %143 = arith.divf %141, %142 : vector<2x128xf32>
    %144 = vector.extract_strided_slice %138 {offsets = [0, 64], sizes = [2, 32], strides = [1, 1]} : vector<2x128xf32> to vector<2x32xf32>
    %145 = math.tanh %144 : vector<2x32xf32>
    %146 = vector.extract_strided_slice %143 {offsets = [0, 0], sizes = [2, 32], strides = [1, 1]} : vector<2x128xf32> to vector<2x32xf32>
    %147 = vector.extract_strided_slice %143 {offsets = [0, 32], sizes = [2, 32], strides = [1, 1]} : vector<2x128xf32> to vector<2x32xf32>
    %148 = vector.extract_strided_slice %143 {offsets = [0, 96], sizes = [2, 32], strides = [1, 1]} : vector<2x128xf32> to vector<2x32xf32>
    %149 = arith.mulf %147, %115 : vector<2x32xf32>
    %150 = arith.mulf %146, %145 : vector<2x32xf32>
    %151 = arith.addf %149, %150 : vector<2x32xf32>
    %152 = math.tanh %151 : vector<2x32xf32>
    %153 = arith.mulf %148, %152 : vector<2x32xf32>
    %cst_40 = arith.constant dense<0.000000e+00> : vector<2x160xf32>
    %154 = tpu.matmul %153, %1, %cst_40 {dimension_numbers = #tpu.dot_dimension_numbers<[1], [0], [0], [1], [0, 0, 1, 1], [], []>} : vector<2x32xf32>, vector<32x160xf32>, vector<2x160xf32> -> vector<2x160xf32>
    %cst_41 = arith.constant dense<0.000000e+00> : vector<2x32xf32>
    %155 = tpu.matmul %151, %2, %cst_41 {dimension_numbers = #tpu.dot_dimension_numbers<[1], [0], [0], [1], [0, 0, 1, 1], [], []>} : vector<2x32xf32>, vector<32x32xf32>, vector<2x32xf32> -> vector<2x32xf32>
    %156 = vector.extract_strided_slice %154 {offsets = [0, 0], sizes = [2, 128], strides = [1, 1]} : vector<2x160xf32> to vector<2x128xf32>
    %157 = vector.extract_strided_slice %154 {offsets = [0, 128], sizes = [2, 32], strides = [1, 1]} : vector<2x160xf32> to vector<2x32xf32>
    %158 = arith.addf %157, %155 : vector<2x32xf32>
    %159 = arith.addf %158, %0 : vector<2x32xf32>
    %160 = math.tanh %159 : vector<2x32xf32>
    %cst_42 = arith.constant dense<0.000000e+00> : vector<2x4xf32>
    %161 = tpu.matmul %160, %3, %cst_42 {dimension_numbers = #tpu.dot_dimension_numbers<[1], [0], [0], [1], [0, 0, 1, 1], [], []>} : vector<2x32xf32>, vector<32x4xf32>, vector<2x4xf32> -> vector<2x4xf32>
    %cst_43 = arith.constant dense<0xFF800000> : vector<2xf32>
    %162 = vector.multi_reduction <maximumf>, %161, %cst_43 [1] : vector<2x4xf32> to vector<2xf32>
    %163 = vector.shape_cast %162 : vector<2xf32> to vector<2x1xf32>
    %164 = vector.broadcast %163 : vector<2x1xf32> to vector<2x4xf32>
    %165 = arith.subf %161, %164 : vector<2x4xf32>
    %166 = math.exp %165 : vector<2x4xf32>
    %cst_44 = arith.constant dense<0.000000e+00> : vector<2xf32>
    %167 = vector.multi_reduction <add>, %166, %cst_44 [1] : vector<2x4xf32> to vector<2xf32>
    %168 = vector.shape_cast %167 : vector<2xf32> to vector<2x1xf32>
    %169 = vector.broadcast %168 : vector<2x1xf32> to vector<2x4xf32>
    %170 = arith.divf %166, %169 : vector<2x4xf32>
    %171 = arith.mulf %170, %161 : vector<2x4xf32>
    %cst_45 = arith.constant dense<0.000000e+00> : vector<2x128xf32>
    %172 = tpu.matmul %171, %4, %cst_45 {dimension_numbers = #tpu.dot_dimension_numbers<[1], [0], [0], [1], [0, 0, 1, 1], [], []>} : vector<2x4xf32>, vector<4x128xf32>, vector<2x128xf32> -> vector<2x128xf32>
    %173 = arith.addf %156, %172 : vector<2x128xf32>
    %174 = arith.addf %173, %7 : vector<2x128xf32>
    %175 = arith.negf %174 : vector<2x128xf32>
    %176 = math.exp %175 : vector<2x128xf32>
    %cst_46 = arith.constant 1.000000e+00 : f32
    %177 = vector.broadcast %cst_46 : f32 to vector<2x128xf32>
    %178 = arith.addf %177, %176 : vector<2x128xf32>
    %179 = arith.divf %177, %178 : vector<2x128xf32>
    %180 = vector.extract_strided_slice %174 {offsets = [0, 64], sizes = [2, 32], strides = [1, 1]} : vector<2x128xf32> to vector<2x32xf32>
    %181 = math.tanh %180 : vector<2x32xf32>
    %182 = vector.extract_strided_slice %179 {offsets = [0, 0], sizes = [2, 32], strides = [1, 1]} : vector<2x128xf32> to vector<2x32xf32>
    %183 = vector.extract_strided_slice %179 {offsets = [0, 32], sizes = [2, 32], strides = [1, 1]} : vector<2x128xf32> to vector<2x32xf32>
    %184 = vector.extract_strided_slice %179 {offsets = [0, 96], sizes = [2, 32], strides = [1, 1]} : vector<2x128xf32> to vector<2x32xf32>
    %185 = arith.mulf %183, %151 : vector<2x32xf32>
    %186 = arith.mulf %182, %181 : vector<2x32xf32>
    %187 = arith.addf %185, %186 : vector<2x32xf32>
    %188 = math.tanh %187 : vector<2x32xf32>
    %189 = arith.mulf %184, %188 : vector<2x32xf32>
    %cst_47 = arith.constant dense<0.000000e+00> : vector<2x160xf32>
    %190 = tpu.matmul %189, %1, %cst_47 {dimension_numbers = #tpu.dot_dimension_numbers<[1], [0], [0], [1], [0, 0, 1, 1], [], []>} : vector<2x32xf32>, vector<32x160xf32>, vector<2x160xf32> -> vector<2x160xf32>
    %cst_48 = arith.constant dense<0.000000e+00> : vector<2x32xf32>
    %191 = tpu.matmul %187, %2, %cst_48 {dimension_numbers = #tpu.dot_dimension_numbers<[1], [0], [0], [1], [0, 0, 1, 1], [], []>} : vector<2x32xf32>, vector<32x32xf32>, vector<2x32xf32> -> vector<2x32xf32>
    %192 = vector.extract_strided_slice %190 {offsets = [0, 0], sizes = [2, 128], strides = [1, 1]} : vector<2x160xf32> to vector<2x128xf32>
    %193 = vector.extract_strided_slice %190 {offsets = [0, 128], sizes = [2, 32], strides = [1, 1]} : vector<2x160xf32> to vector<2x32xf32>
    %194 = arith.addf %193, %191 : vector<2x32xf32>
    %195 = arith.addf %194, %0 : vector<2x32xf32>
    %196 = math.tanh %195 : vector<2x32xf32>
    %cst_49 = arith.constant dense<0.000000e+00> : vector<2x4xf32>
    %197 = tpu.matmul %196, %3, %cst_49 {dimension_numbers = #tpu.dot_dimension_numbers<[1], [0], [0], [1], [0, 0, 1, 1], [], []>} : vector<2x32xf32>, vector<32x4xf32>, vector<2x4xf32> -> vector<2x4xf32>
    %cst_50 = arith.constant dense<0xFF800000> : vector<2xf32>
    %198 = vector.multi_reduction <maximumf>, %197, %cst_50 [1] : vector<2x4xf32> to vector<2xf32>
    %199 = vector.shape_cast %198 : vector<2xf32> to vector<2x1xf32>
    %200 = vector.broadcast %199 : vector<2x1xf32> to vector<2x4xf32>
    %201 = arith.subf %197, %200 : vector<2x4xf32>
    %202 = math.exp %201 : vector<2x4xf32>
    %cst_51 = arith.constant dense<0.000000e+00> : vector<2xf32>
    %203 = vector.multi_reduction <add>, %202, %cst_51 [1] : vector<2x4xf32> to vector<2xf32>
    %204 = vector.shape_cast %203 : vector<2xf32> to vector<2x1xf32>
    %205 = vector.broadcast %204 : vector<2x1xf32> to vector<2x4xf32>
    %206 = arith.divf %202, %205 : vector<2x4xf32>
    %207 = arith.mulf %206, %197 : vector<2x4xf32>
    %cst_52 = arith.constant dense<0.000000e+00> : vector<2x128xf32>
    %208 = tpu.matmul %207, %4, %cst_52 {dimension_numbers = #tpu.dot_dimension_numbers<[1], [0], [0], [1], [0, 0, 1, 1], [], []>} : vector<2x4xf32>, vector<4x128xf32>, vector<2x128xf32> -> vector<2x128xf32>
    %209 = arith.addf %192, %208 : vector<2x128xf32>
    %210 = arith.addf %209, %7 : vector<2x128xf32>
    %211 = arith.negf %210 : vector<2x128xf32>
    %212 = math.exp %211 : vector<2x128xf32>
    %cst_53 = arith.constant 1.000000e+00 : f32
    %213 = vector.broadcast %cst_53 : f32 to vector<2x128xf32>
    %214 = arith.addf %213, %212 : vector<2x128xf32>
    %215 = arith.divf %213, %214 : vector<2x128xf32>
    %216 = vector.extract_strided_slice %210 {offsets = [0, 64], sizes = [2, 32], strides = [1, 1]} : vector<2x128xf32> to vector<2x32xf32>
    %217 = math.tanh %216 : vector<2x32xf32>
    %218 = vector.extract_strided_slice %215 {offsets = [0, 0], sizes = [2, 32], strides = [1, 1]} : vector<2x128xf32> to vector<2x32xf32>
    %219 = vector.extract_strided_slice %215 {offsets = [0, 32], sizes = [2, 32], strides = [1, 1]} : vector<2x128xf32> to vector<2x32xf32>
    %220 = vector.extract_strided_slice %215 {offsets = [0, 96], sizes = [2, 32], strides = [1, 1]} : vector<2x128xf32> to vector<2x32xf32>
    %221 = arith.mulf %219, %187 : vector<2x32xf32>
    %222 = arith.mulf %218, %217 : vector<2x32xf32>
    %223 = arith.addf %221, %222 : vector<2x32xf32>
    %224 = math.tanh %223 : vector<2x32xf32>
    %225 = arith.mulf %220, %224 : vector<2x32xf32>
    %cst_54 = arith.constant dense<0.000000e+00> : vector<2x160xf32>
    %226 = tpu.matmul %225, %1, %cst_54 {dimension_numbers = #tpu.dot_dimension_numbers<[1], [0], [0], [1], [0, 0, 1, 1], [], []>} : vector<2x32xf32>, vector<32x160xf32>, vector<2x160xf32> -> vector<2x160xf32>
    %cst_55 = arith.constant dense<0.000000e+00> : vector<2x32xf32>
    %227 = tpu.matmul %223, %2, %cst_55 {dimension_numbers = #tpu.dot_dimension_numbers<[1], [0], [0], [1], [0, 0, 1, 1], [], []>} : vector<2x32xf32>, vector<32x32xf32>, vector<2x32xf32> -> vector<2x32xf32>
    %228 = vector.extract_strided_slice %226 {offsets = [0, 0], sizes = [2, 128], strides = [1, 1]} : vector<2x160xf32> to vector<2x128xf32>
    %229 = vector.extract_strided_slice %226 {offsets = [0, 128], sizes = [2, 32], strides = [1, 1]} : vector<2x160xf32> to vector<2x32xf32>
    %230 = arith.addf %229, %227 : vector<2x32xf32>
    %231 = arith.addf %230, %0 : vector<2x32xf32>
    %232 = math.tanh %231 : vector<2x32xf32>
    %cst_56 = arith.constant dense<0.000000e+00> : vector<2x4xf32>
    %233 = tpu.matmul %232, %3, %cst_56 {dimension_numbers = #tpu.dot_dimension_numbers<[1], [0], [0], [1], [0, 0, 1, 1], [], []>} : vector<2x32xf32>, vector<32x4xf32>, vector<2x4xf32> -> vector<2x4xf32>
    %cst_57 = arith.constant dense<0xFF800000> : vector<2xf32>
    %234 = vector.multi_reduction <maximumf>, %233, %cst_57 [1] : vector<2x4xf32> to vector<2xf32>
    %235 = vector.shape_cast %234 : vector<2xf32> to vector<2x1xf32>
    %236 = vector.broadcast %235 : vector<2x1xf32> to vector<2x4xf32>
    %237 = arith.subf %233, %236 : vector<2x4xf32>
    %238 = math.exp %237 : vector<2x4xf32>
    %cst_58 = arith.constant dense<0.000000e+00> : vector<2xf32>
    %239 = vector.multi_reduction <add>, %238, %cst_58 [1] : vector<2x4xf32> to vector<2xf32>
    %240 = vector.shape_cast %239 : vector<2xf32> to vector<2x1xf32>
    %241 = vector.broadcast %240 : vector<2x1xf32> to vector<2x4xf32>
    %242 = arith.divf %238, %241 : vector<2x4xf32>
    %243 = arith.mulf %242, %233 : vector<2x4xf32>
    %cst_59 = arith.constant dense<0.000000e+00> : vector<2x128xf32>
    %244 = tpu.matmul %243, %4, %cst_59 {dimension_numbers = #tpu.dot_dimension_numbers<[1], [0], [0], [1], [0, 0, 1, 1], [], []>} : vector<2x4xf32>, vector<4x128xf32>, vector<2x128xf32> -> vector<2x128xf32>
    %245 = arith.addf %228, %244 : vector<2x128xf32>
    %246 = arith.addf %245, %7 : vector<2x128xf32>
    %247 = arith.negf %246 : vector<2x128xf32>
    %248 = math.exp %247 : vector<2x128xf32>
    %cst_60 = arith.constant 1.000000e+00 : f32
    %249 = vector.broadcast %cst_60 : f32 to vector<2x128xf32>
    %250 = arith.addf %249, %248 : vector<2x128xf32>
    %251 = arith.divf %249, %250 : vector<2x128xf32>
    %252 = vector.extract_strided_slice %246 {offsets = [0, 64], sizes = [2, 32], strides = [1, 1]} : vector<2x128xf32> to vector<2x32xf32>
    %253 = math.tanh %252 : vector<2x32xf32>
    %254 = vector.extract_strided_slice %251 {offsets = [0, 0], sizes = [2, 32], strides = [1, 1]} : vector<2x128xf32> to vector<2x32xf32>
    %255 = vector.extract_strided_slice %251 {offsets = [0, 32], sizes = [2, 32], strides = [1, 1]} : vector<2x128xf32> to vector<2x32xf32>
    %256 = vector.extract_strided_slice %251 {offsets = [0, 96], sizes = [2, 32], strides = [1, 1]} : vector<2x128xf32> to vector<2x32xf32>
    %257 = arith.mulf %255, %223 : vector<2x32xf32>
    %258 = arith.mulf %254, %253 : vector<2x32xf32>
    %259 = arith.addf %257, %258 : vector<2x32xf32>
    %260 = math.tanh %259 : vector<2x32xf32>
    %261 = arith.mulf %256, %260 : vector<2x32xf32>
    %cst_61 = arith.constant dense<0.000000e+00> : vector<2x160xf32>
    %262 = tpu.matmul %261, %1, %cst_61 {dimension_numbers = #tpu.dot_dimension_numbers<[1], [0], [0], [1], [0, 0, 1, 1], [], []>} : vector<2x32xf32>, vector<32x160xf32>, vector<2x160xf32> -> vector<2x160xf32>
    %cst_62 = arith.constant dense<0.000000e+00> : vector<2x32xf32>
    %263 = tpu.matmul %259, %2, %cst_62 {dimension_numbers = #tpu.dot_dimension_numbers<[1], [0], [0], [1], [0, 0, 1, 1], [], []>} : vector<2x32xf32>, vector<32x32xf32>, vector<2x32xf32> -> vector<2x32xf32>
    %264 = vector.extract_strided_slice %262 {offsets = [0, 0], sizes = [2, 128], strides = [1, 1]} : vector<2x160xf32> to vector<2x128xf32>
    %265 = vector.extract_strided_slice %262 {offsets = [0, 128], sizes = [2, 32], strides = [1, 1]} : vector<2x160xf32> to vector<2x32xf32>
    %266 = arith.addf %265, %263 : vector<2x32xf32>
    %267 = arith.addf %266, %0 : vector<2x32xf32>
    %268 = math.tanh %267 : vector<2x32xf32>
    %cst_63 = arith.constant dense<0.000000e+00> : vector<2x4xf32>
    %269 = tpu.matmul %268, %3, %cst_63 {dimension_numbers = #tpu.dot_dimension_numbers<[1], [0], [0], [1], [0, 0, 1, 1], [], []>} : vector<2x32xf32>, vector<32x4xf32>, vector<2x4xf32> -> vector<2x4xf32>
    %cst_64 = arith.constant dense<0xFF800000> : vector<2xf32>
    %270 = vector.multi_reduction <maximumf>, %269, %cst_64 [1] : vector<2x4xf32> to vector<2xf32>
    %271 = vector.shape_cast %270 : vector<2xf32> to vector<2x1xf32>
    %272 = vector.broadcast %271 : vector<2x1xf32> to vector<2x4xf32>
    %273 = arith.subf %269, %272 : vector<2x4xf32>
    %274 = math.exp %273 : vector<2x4xf32>
    %cst_65 = arith.constant dense<0.000000e+00> : vector<2xf32>
    %275 = vector.multi_reduction <add>, %274, %cst_65 [1] : vector<2x4xf32> to vector<2xf32>
    %276 = vector.shape_cast %275 : vector<2xf32> to vector<2x1xf32>
    %277 = vector.broadcast %276 : vector<2x1xf32> to vector<2x4xf32>
    %278 = arith.divf %274, %277 : vector<2x4xf32>
    %279 = arith.mulf %278, %269 : vector<2x4xf32>
    %cst_66 = arith.constant dense<0.000000e+00> : vector<2x128xf32>
    %280 = tpu.matmul %279, %4, %cst_66 {dimension_numbers = #tpu.dot_dimension_numbers<[1], [0], [0], [1], [0, 0, 1, 1], [], []>} : vector<2x4xf32>, vector<4x128xf32>, vector<2x128xf32> -> vector<2x128xf32>
    %281 = arith.addf %264, %280 : vector<2x128xf32>
    %282 = arith.addf %281, %7 : vector<2x128xf32>
    %283 = arith.negf %282 : vector<2x128xf32>
    %284 = math.exp %283 : vector<2x128xf32>
    %cst_67 = arith.constant 1.000000e+00 : f32
    %285 = vector.broadcast %cst_67 : f32 to vector<2x128xf32>
    %286 = arith.addf %285, %284 : vector<2x128xf32>
    %287 = arith.divf %285, %286 : vector<2x128xf32>
    %288 = vector.extract_strided_slice %282 {offsets = [0, 64], sizes = [2, 32], strides = [1, 1]} : vector<2x128xf32> to vector<2x32xf32>
    %289 = math.tanh %288 : vector<2x32xf32>
    %290 = vector.extract_strided_slice %287 {offsets = [0, 0], sizes = [2, 32], strides = [1, 1]} : vector<2x128xf32> to vector<2x32xf32>
    %291 = vector.extract_strided_slice %287 {offsets = [0, 32], sizes = [2, 32], strides = [1, 1]} : vector<2x128xf32> to vector<2x32xf32>
    %292 = vector.extract_strided_slice %287 {offsets = [0, 96], sizes = [2, 32], strides = [1, 1]} : vector<2x128xf32> to vector<2x32xf32>
    %293 = arith.mulf %291, %259 : vector<2x32xf32>
    %294 = arith.mulf %290, %289 : vector<2x32xf32>
    %295 = arith.addf %293, %294 : vector<2x32xf32>
    %296 = math.tanh %295 : vector<2x32xf32>
    %297 = arith.mulf %292, %296 : vector<2x32xf32>
    %298 = tpu.concatenate %45, %81, %117, %153, %189, %225, %261, %297 in 1 : vector<2x32xf32>, vector<2x32xf32>, vector<2x32xf32>, vector<2x32xf32>, vector<2x32xf32>, vector<2x32xf32>, vector<2x32xf32>, vector<2x32xf32> -> vector<2x256xf32>
    %c0_68 = arith.constant 0 : index
    %c0_69 = arith.constant 0 : index
    %299 = vector.load %arg7[%c0_68, %c0_69] : memref<2x256xf32, #tpu.memory_space<vmem>>, vector<2x256xf32>
    tpu.vector_store %arg7[%c0_68, %c0_69], %298 {strides = array<i32>} : memref<2x256xf32, #tpu.memory_space<vmem>>, vector<2x256xf32>,
    return
  }
  func.func @transform_0(%arg0: i32) -> (i32, i32) {
    %c0_i32 = arith.constant 0 : i32
    %c0_i32_0 = arith.constant 0 : i32
    return %arg0, %c0_i32 : i32, i32
  }
  func.func @transform_1(%arg0: i32) -> (i32, i32) {
    %c0_i32 = arith.constant 0 : i32
    %c0_i32_0 = arith.constant 0 : i32
    %c0_i32_1 = arith.constant 0 : i32
    return %c0_i32, %c0_i32_0 : i32, i32
  }
  func.func @transform_2(%arg0: i32) -> (i32, i32) {
    %c0_i32 = arith.constant 0 : i32
    %c0_i32_0 = arith.constant 0 : i32
    %c0_i32_1 = arith.constant 0 : i32
    return %c0_i32, %c0_i32_0 : i32, i32
  }
  func.func @transform_3(%arg0: i32) -> (i32, i32) {
    %c0_i32 = arith.constant 0 : i32
    %c0_i32_0 = arith.constant 0 : i32
    %c0_i32_1 = arith.constant 0 : i32
    return %c0_i32, %c0_i32_0 : i32, i32
  }
  func.func @transform_4(%arg0: i32) -> (i32, i32) {
    %c0_i32 = arith.constant 0 : i32
    %c0_i32_0 = arith.constant 0 : i32
    %c0_i32_1 = arith.constant 0 : i32
    return %c0_i32, %c0_i32_0 : i32, i32
  }
  func.func @transform_5(%arg0: i32) -> (i32, i32) {
    %c0_i32 = arith.constant 0 : i32
    %c0_i32_0 = arith.constant 0 : i32
    %c0_i32_1 = arith.constant 0 : i32
    return %c0_i32, %c0_i32_0 : i32, i32
  }
  func.func @transform_6(%arg0: i32) -> (i32, i32) {
    %c0_i32 = arith.constant 0 : i32
    %c0_i32_0 = arith.constant 0 : i32
    return %arg0, %c0_i32 : i32, i32
  }
}

</mosaic_0001>

<bundles_post_ra>
// kernel: tpu_custom_call.1
= control target key start
LH: loop header
LB: loop body
LE: loop exit
PB: predicated region body
PF: predicated region fallthrough
CT: control target
= control target key end

     0   :  { %11 = vsyncpa [#allocation3], 0  ;;  %s4005_s0 = inlined_call_operand.hbm [shape: f32[2,32], index: 0, kind: input, shape index: {}]   ;;  %s4006_s1 = inlined_call_operand.hbm [shape: f32[32,160], index: 1, kind: input, shape index: {}]   ;;  %s4007_s2 = inlined_call_operand.vmem [shape: f32[32,32], index: 2, kind: input, shape index: {}]   ;;  %s4008_s3 = inlined_call_operand.vmem [shape: f32[32,4], index: 3, kind: input, shape index: {}]   ;;  %s4009_s4 = inlined_call_operand.vmem [shape: f32[4,128], index: 4, kind: input, shape index: {}]   ;;  %s4010_s5 = inlined_call_operand.vmem [shape: f32[1,128], index: 5, kind: input, shape index: {}]   ;;  %s4011_s6 = inlined_call_operand.hbm [shape: f32[2,256], index: 6, kind: output, shape index: {}]  }
   0x1   :  { %12 = vsyncpa [#allocation6], 0 }
   0x2   :  { %13 = vsyncpa [#allocation4], 0  ;;  %s3396_s21 = smov [#allocation2]   ;;  %s3397_s23 = smov [#allocation5]  }
   0x3   :  { %s20_s22 = sshll.u32 %s3396_s21, 4  ;;  %s29_s24 = sshll.u32 %s3397_s23, 4  ;;  %s21_s22 = int_to_ptr.vmem [resolvable:$true] %s20_s22  ;;  %s30_s24 = int_to_ptr.vmem [resolvable:$true] %s29_s24 }
   0x4   :  { %s3338_s25 = scalar_lea.vmem %s21_s22, 32  ;;  %p3343_p1 = scmp.lt.s32.totalorder %s21_s22, %s21_s22 }
   0x5   :  { %p3339_p0 = scmp.ne.s32.totalorder %s21_s22, %s3338_s25  ;;  %p3344_p2 = scmp.lt.s32.totalorder %s3338_s25, %s3338_s25 }
   0x7   :  { %p3345_p3 = por %p3344_p2, %p3343_p1 }
   0x9   :  { %p3346_p4 = pnand %p3345_p3, %p3339_p0 }
   0xb   :  { %3349 = shalt.err (!%p3346_p4)
}
   0xc   :  { %23 = dma.hbm_to_vmem [thread:$0]  %s4005_s0, 32, %s21_s22, [#allocation3]  }
   0xd   :  { %s3358_s28 = scalar_lea.vmem %s30_s24, 1024  ;;  %p3363_p6 = scmp.lt.s32.totalorder %s30_s24, %s30_s24 }
   0xe   :  { %p3359_p5 = scmp.ne.s32.totalorder %s30_s24, %s3358_s28  ;;  %p3364_p7 = scmp.lt.s32.totalorder %s3358_s28, %s3358_s28 }
  0x10   :  { %p3365_p8 = por %p3364_p7, %p3363_p6 }
  0x12   :  { %p3366_p9 = pnand %p3365_p8, %p3359_p5 }
  0x14   :  { %3369 = shalt.err (!%p3366_p9)
}
  0x15   :  { %s3398_s29 = smov 256   ;;  %s3399_s30 = smov 16  }
  0x16   :  { %35 = dma.hbm_to_vmem [thread:$0]  %s4006_s1, 1024, %s30_s24, [#allocation6], %s3398_s29, %s3398_s29, %s3399_s30  }
  0x17   :  { %3390 = dma.done.wait [#allocation3], 32  }
  0x18   :  { %3391 = vsyncadd [#allocation3], 4294967264 }
  0x19   :  { %3392 = dma.done.wait [#allocation6], 1024  }
  0x1a   :  { %3393 = vsyncadd [#allocation6], 4294966272  ;;  %v3400_v0 = vmov 0.0   ;;  %vm3401_vm0 = vmmov 0   ;;  %v3451_v1 = vld [vmem:[#allocation5 + $0x38] sm:$0xff]  ;;  %v3453_v2 = vld [vmem:[#allocation5 + $0x30] sm:$0xff] }
  0x1b   :  { %2973 = vmatprep.subr.mxu1 %v3400_v0  ;;  %143 = vmatprep.mubr.f32.mxu0 %v3400_v0  ;;  %v3458_v3 = vld [vmem:[%s4007_s2 + $0x18] sm:$0xff]  ;;  %v3462_v4 = vld [vmem:[#allocation5 + $0x28] sm:$0xff]  ;;  %v3464_v5 = vld [vmem:[#allocation5 + $0x20] sm:$0xff]  ;;  %vm75_vm1 = vcmask 261120   ;;  %vm296_vm2 = vcmask 25600   ;;  %vm313_vm3 = vcmask 1043456  }
  0x1c   :  { %2981 = vmatprep.mubr.msk.f32.mxu1 %vm3401_vm0, %v3400_v0  ;;  %103 = vmatprep.subr.mxu0 %v3451_v1  ;;  %v3469_v6 = vld [vmem:[%s4007_s2 + $0x10] sm:$0xff]  ;;  %v3473_v7 = vld [vmem:[#allocation5 + $0x18] sm:$0xff]  ;;  %v3478_v8 = vld [vmem:[%s4007_s2 + $0x8] sm:$0xff]  ;;  %vm309_vm4 = vcmask 31744   ;;  %s3402_s27 = smov 64   ;;  %s3403_s28 = smov 32  }
  0x1d   :  { %2974 = vmatpush3.msra.mxu1 %v3458_v3  ;;  %104 = vmatpush1.msra.mxu0 %v3453_v2  ;;  %v3482_v9 = vld [vmem:[#allocation5 + $0x10] sm:$0xff]  ;;  %v3486_v10 = vld [vmem:[#allocation5 + $0x8] sm:$0xff]  ;;  %v3491_v11 = vld [vmem:[%s4007_s2] sm:$0xff]  ;;  %s3404_s29 = smov 96   ;;  %vm2794_vm5 = vcmask 523264   ;;  %vm2796_vm6 = vcmask 785408  }
  0x1e   :  { %2975 = vmatprep.subr.mxu1 %v3400_v0  ;;  %105 = vmatprep.subr.mxu0 %v3462_v4  ;;  %v3495_v12 = vld [vmem:[#allocation5] sm:$0xff]  ;;  %v3513_v13 = vld [vmem:[%s4008_s3 + $0x18] sm:$0xff]  ;;  %v3518_v14 = vld [vmem:[%s4008_s3 + $0x10] sm:$0xff] }
  0x1f   :  { %2976 = vmatpush3.msra.mxu1 %v3469_v6  ;;  %106 = vmatpush1.msra.mxu0 %v3464_v5  ;;  %v3525_v15 = vld [vmem:[%s4008_s3 + $0x8] sm:$0xff]  ;;  %v3532_v16 = vld [vmem:[%s4008_s3] sm:$0xff] }
  0x20   :  { %2977 = vmatprep.subr.mxu1 %v3400_v0  ;;  %107 = vmatprep.subr.mxu0 %v3473_v7  ;;  %v3538_v20 = vld [vmem:[#allocation2] sm:$0x3] }
  0x21   :  { %2978 = vmatpush3.msra.mxu1 %v3478_v8  ;;  %108 = vmatpush1.msra.mxu0 %v3482_v9  ;;  %v3557_v33 = vld [vmem:[%s4009_s4] sm:$0xf] }
  0x22   :  { %2979 = vmatprep.subr.mxu1 %v3400_v0  ;;  %109 = vmatprep.subr.mxu0 %v3486_v10  ;;  %v3575_v38 = vld [vmem:[%s4010_s5] ss:$0 sm:$0xff] }
  0x23   :  { %2980 = vmatpush3.msra.mxu1 %v3491_v11  ;;  %110 = vmatpush1.msra.mxu0 %v3495_v12 }
  0x24   :  { %2982 = vmatmul.mubr.f32.vlgmr.msra.gmra.mxu1 %v3400_v0  ;;  %144 = vmatmul.mubr.f32.vlgmr.msra.gmra.mxu0 %v3400_v0 }
  0x25   :  { %2984 = vmatprep.subr.mxu0 %v3400_v0  ;;  %2992 = vmatprep.mubr.msk.f32.mxu0 %vm3401_vm0, %v3400_v0 }
  0x26   :  { %2995 = vmatprep.subr.mxu1 %v3400_v0  ;;  %2997 = vmatprep.mubr.msk.f32.mxu1 %vm3401_vm0, %v3400_v0 }
  0x27   :  { %2985 = vmatpush3.msra.mxu0 %v3513_v13  ;;  %2996 = vmatpush3.msk.msra.mxu1 %vm313_vm3, %v3557_v33 }
  0x28   :  { %2986 = vmatprep.subr.mxu0 %v3400_v0  ;;  %442 = vmatprep.subr.mxu1 %v3451_v1 }
  0x29   :  { %2987 = vmatpush3.msra.mxu0 %v3518_v14 }
  0x2a   :  { %2988 = vmatprep.subr.mxu0 %v3400_v0 }
  0x2b   :  { %2989 = vmatpush3.msra.mxu0 %v3525_v15 }
  0x2c   :  { %2990 = vmatprep.subr.mxu0 %v3400_v0 }
  0x2d   :  { %2991 = vmatpush3.msra.mxu0 %v3532_v16 }
  0x2e   :  { %3000 = vmatprep.subr.mxu0 %v3400_v0 }
  0xe4   :  { %v216_v17 = vpop.f32.mrf.mxu1  ;;  %v145_v18 = vpop.f32.mrf.mxu0 }
  0xe6   :  { %v2983_v19 = vpop.f32.mrf.mxu1  ;;  %v147_v21 = vpop.f32.mrf.mxu0 }
  0xe7   :  { %v220_v22 = vadd.f32 %v216_v17, %v147_v21 }
  0xe9   :  { %v221_v23 = vadd.f32 %v220_v22, %v3538_v20 }
  0xeb   :  { %3199 = vtanh.f32 %v221_v23 }
  0xf8   :  { %v3200_v24 = vpop.eup %3199 }
  0xf9   :  { %2993 = vmatmul.mubr.msk.f32.vlgmr.msra.gmra.mxu0 %vm75_vm1, %v3200_v24 }
  0xfa   :  { %3001 = vmatpush3.msra.mxu0 %v3458_v3  ;;  %3008 = vmatprep.mubr.msk.f32.mxu0 %vm3401_vm0, %v3400_v0 }
  0xfb   :  { %3002 = vmatprep.subr.mxu0 %v3400_v0 }
  0xfc   :  { %3003 = vmatpush3.msra.mxu0 %v3469_v6 }
  0xfd   :  { %3004 = vmatprep.subr.mxu0 %v3400_v0 }
  0xfe   :  { %3005 = vmatpush3.msra.mxu0 %v3478_v8 }
  0xff   :  { %3006 = vmatprep.subr.mxu0 %v3400_v0 }
 0x100   :  { %3007 = vmatpush3.msra.mxu0 %v3491_v11 }
 0x101   :  { %3022 = vmatprep.subr.mxu0 %v3400_v0 }
 0x1b9   :  { %v292_v25 = vpop.f32.mrf.mxu0 }
 0x1ba   :  { %v297_v26 = vsel %vm296_vm2, %v292_v25, -inf }
 0x1bb   :  { %298 = vmax.xlane.f32.xlu0 %v297_v26  ;;  %v2994_v27 = vpop.f32.mrf.mxu0 }
 0x244   :  { %v299_v28 = vpop.xlane.xlu0 %298 }
 0x245   :  { %v300_v29 = vsub.f32 %v292_v25, %v299_v28 }
 0x247   :  { %v301_v30 = vmul.f32 1.442695, %v300_v29 }
 0x249   :  { %3201 = vpow2.f32 %v301_v30 }
 0x256   :  { %v3202_v31 = vpop.eup %3201 }
 0x257   :  { %v303_v32 = vsel %vm296_vm2, %v3202_v31, 0.0 }
 0x258   :  { %304 = vadd.xlane.f32.xlu0 %v303_v32 }
 0x2e1   :  { %v305_v34 = vpop.xlane.xlu0 %304 }
 0x2e2   :  { %3203 = vrcp.f32 %v305_v34 }
 0x2ef   :  { %v3204_v35 = vpop.eup %3203 }
 0x2f0   :  { %v307_v36 = vmul.f32 %v3204_v35, %v3202_v31 }
 0x2f2   :  { %v308_v37 = vmul.f32 %v307_v36, %v292_v25 }
 0x2f4   :  { %2998 = vmatmul.mubr.msk.f32.vlgmr.msra.gmra.mxu1 %vm309_vm4, %v308_v37 }
 0x2f5   :  { %443 = vmatpush1.msra.mxu1 %v3453_v2  ;;  %482 = vmatprep.mubr.f32.mxu1 %v3400_v0 }
 0x2f6   :  { %444 = vmatprep.subr.mxu1 %v3462_v4 }
 0x2f7   :  { %445 = vmatpush1.msra.mxu1 %v3464_v5 }
 0x2f8   :  { %446 = vmatprep.subr.mxu1 %v3473_v7 }
 0x2f9   :  { %447 = vmatpush1.msra.mxu1 %v3482_v9 }
 0x2fa   :  { %448 = vmatprep.subr.mxu1 %v3486_v10 }
 0x2fb   :  { %449 = vmatpush1.msra.mxu1 %v3495_v12 }
 0x2fc   :  { %3011 = vmatprep.subr.mxu1 %v3400_v0 }
 0x3b4   :  { %v383_v39 = vpop.f32.mrf.mxu1 }
 0x3b5   :  { %v387_v40 = vadd.f32 %v383_v39, %v145_v18 }
 0x3b6   :  { %v2999_v41 = vpop.f32.mrf.mxu1 }
 0x3b7   :  { %v388_v42 = vadd.f32 %v3575_v38, %v387_v40 }
 0x3b9   :  { %3205 = vtanh.f32 %v388_v42  ;;  %v2833_v44 = vmul.f32 -1.442695, %v388_v42 }
 0x3bb   :  { %3207 = vpow2.f32 %v2833_v44 }
 0x3c6   :  { %v3206_v43 = vpop.eup %3205 }
 0x3c7   :  { %398 = vrot.lane.b32.xlu1 %v3206_v43, %s3402_s27 }
 0x3c8   :  { %v3208_v45 = vpop.eup %3207 }
 0x3c9   :  { %v392_v46 = vadd.f32 1.0, %v3208_v45 }
 0x3cb   :  { %3209 = vrcp.f32 %v392_v46 }
 0x3d8   :  { %v3210_v47 = vpop.eup %3209 }
 0x3d9   :  { %v396_v50 = vmul.f32 0.0, %v3210_v47 }
 0x439   :  { %v399_v48 = vpop.permute.xlu1 %398 }
 0x43a   :  { %v401_v49 = vmul.f32 %v3210_v47, %v399_v48 }
 0x43c   :  { %403 = vrot.lane.b32.xlu1 %v401_v49, %s3403_s28 }
 0x4ae   :  { %v404_v51 = vpop.permute.xlu1 %403 }
 0x4af   :  { %v3580_v52 = vadd.f32 %v404_v51, %v396_v50 }
 0x4b1   :  { %3211 = vtanh.f32 %v3580_v52 }
 0x4be   :  { %v3212_v53 = vpop.eup %3211 }
 0x4bf   :  { %409 = vrot.lane.b32.xlu0 %v3212_v53, %s3402_s27 }
 0x531   :  { %v410_v54 = vpop.permute.xlu0 %409 }
 0x532   :  { %v412_v55 = vmul.f32 %v3210_v47, %v410_v54 }
 0x534   :  { %414 = vrot.lane.b32.xlu1 %v412_v55, %s3403_s28 }
 0x538   :  { %490 = vrot.lane.b32.xlu1 %v3580_v52, %s3404_s29 }
 0x5a6   :  { %v3587_v56 = vpop.permute.xlu1 %414 }
 0x5a7   :  { %2834 = vmatmul.mubr.msk.f32.vlgmr.msra.gmra.mxu1 %vm75_vm1, %v3587_v56 }
 0x5a8   :  { %3012 = vmatpush3.msra.mxu1 %v3513_v13  ;;  %3019 = vmatprep.mubr.msk.f32.mxu1 %vm3401_vm0, %v3400_v0 }
 0x5a9   :  { %3013 = vmatprep.subr.mxu1 %v3400_v0 }
 0x5aa   :  { %v491_v57 = vpop.permute.xlu1 %490  ;;  %3014 = vmatpush3.msra.mxu1 %v3518_v14 }
 0x5ab   :  { %3009 = vmatmul.mubr.msk.f32.vlgmr.msra.gmra.mxu0 %vm75_vm1, %v491_v57  ;;  %3015 = vmatprep.subr.mxu1 %v3400_v0 }
 0x5ac   :  { %3016 = vmatpush3.msra.mxu1 %v3525_v15  ;;  %3023 = vmatpush3.msk.msra.mxu0 %vm313_vm3, %v3557_v33 }
 0x5ad   :  { %3017 = vmatprep.subr.mxu1 %v3400_v0  ;;  %3024 = vmatprep.mubr.msk.f32.mxu0 %vm3401_vm0, %v3400_v0 }
 0x5ae   :  { %3018 = vmatpush3.msra.mxu1 %v3532_v16  ;;  %780 = vmatprep.subr.mxu0 %v3451_v1 }
 0x5af   :  { %3027 = vmatprep.subr.mxu1 %v3400_v0 }
 0x667   :  { %v484_v58 = vpop.f32.mrf.mxu1 }
 0x669   :  { %v486_v59 = vpop.f32.mrf.mxu1 }
 0x66b   :  { %v560_v60 = vpop.f32.mrf.mxu0 }
 0x66c   :  { %v564_v61 = vadd.f32 %v560_v60, %v486_v59 }
 0x66d   :  { %v3010_v62 = vpop.f32.mrf.mxu0 }
 0x66e   :  { %v565_v63 = vadd.f32 %v564_v61, %v3538_v20 }
 0x670   :  { %3213 = vtanh.f32 %v565_v63 }
 0x67d   :  { %v3214_v17 = vpop.eup %3213 }
 0x67e   :  { %3020 = vmatmul.mubr.msk.f32.vlgmr.msra.gmra.mxu1 %vm75_vm1, %v3214_v17 }
 0x67f   :  { %3028 = vmatpush3.msra.mxu1 %v3458_v3  ;;  %3035 = vmatprep.mubr.msk.f32.mxu1 %vm3401_vm0, %v3400_v0 }
 0x680   :  { %3029 = vmatprep.subr.mxu1 %v3400_v0 }
 0x681   :  { %3030 = vmatpush3.msra.mxu1 %v3469_v6 }
 0x682   :  { %3031 = vmatprep.subr.mxu1 %v3400_v0 }
 0x683   :  { %3032 = vmatpush3.msra.mxu1 %v3478_v8 }
 0x684   :  { %3033 = vmatprep.subr.mxu1 %v3400_v0 }
 0x685   :  { %3034 = vmatpush3.msra.mxu1 %v3491_v11 }
 0x686   :  { %3049 = vmatprep.subr.mxu1 %v3400_v0 }
 0x73e   :  { %v636_v18 = vpop.f32.mrf.mxu1 }
 0x73f   :  { %v640_v19 = vsel %vm296_vm2, %v636_v18, -inf }
 0x740   :  { %641 = vmax.xlane.f32.xlu1 %v640_v19  ;;  %v3021_v21 = vpop.f32.mrf.mxu1 }
 0x7c9   :  { %v642_v22 = vpop.xlane.xlu1 %641 }
 0x7ca   :  { %v643_v23 = vsub.f32 %v636_v18, %v642_v22 }
 0x7cc   :  { %v644_v24 = vmul.f32 1.442695, %v643_v23 }
 0x7ce   :  { %3215 = vpow2.f32 %v644_v24 }
 0x7db   :  { %v3216_v25 = vpop.eup %3215 }
 0x7dc   :  { %v646_v26 = vsel %vm296_vm2, %v3216_v25, 0.0 }
 0x7dd   :  { %647 = vadd.xlane.f32.xlu0 %v646_v26 }
 0x866   :  { %v648_v27 = vpop.xlane.xlu0 %647 }
 0x867   :  { %3217 = vrcp.f32 %v648_v27 }
 0x874   :  { %v3218_v28 = vpop.eup %3217 }
 0x875   :  { %v650_v29 = vmul.f32 %v3218_v28, %v3216_v25 }
 0x877   :  { %v651_v30 = vmul.f32 %v650_v29, %v636_v18 }
 0x879   :  { %3025 = vmatmul.mubr.msk.f32.vlgmr.msra.gmra.mxu0 %vm309_vm4, %v651_v30 }
 0x87a   :  { %781 = vmatpush1.msra.mxu0 %v3453_v2  ;;  %820 = vmatprep.mubr.f32.mxu0 %v3400_v0 }
 0x87b   :  { %782 = vmatprep.subr.mxu0 %v3462_v4 }
 0x87c   :  { %783 = vmatpush1.msra.mxu0 %v3464_v5 }
 0x87d   :  { %784 = vmatprep.subr.mxu0 %v3473_v7 }
 0x87e   :  { %785 = vmatpush1.msra.mxu0 %v3482_v9 }
 0x87f   :  { %786 = vmatprep.subr.mxu0 %v3486_v10 }
 0x880   :  { %787 = vmatpush1.msra.mxu0 %v3495_v12 }
 0x881   :  { %3038 = vmatprep.subr.mxu0 %v3400_v0 }
 0x939   :  { %v721_v31 = vpop.f32.mrf.mxu0 }
 0x93a   :  { %v725_v32 = vadd.f32 %v721_v31, %v484_v58 }
 0x93b   :  { %v3026_v34 = vpop.f32.mrf.mxu0 }
 0x93c   :  { %v726_v35 = vadd.f32 %v3575_v38, %v725_v32 }
 0x93e   :  { %3219 = vtanh.f32 %v726_v35  ;;  %v2839_v37 = vmul.f32 -1.442695, %v726_v35 }
 0x940   :  { %3221 = vpow2.f32 %v2839_v37 }
 0x94b   :  { %v3220_v36 = vpop.eup %3219 }
 0x94c   :  { %736 = vrot.lane.b32.xlu1 %v3220_v36, %s3402_s27 }
 0x94d   :  { %v3222_v39 = vpop.eup %3221 }
 0x94e   :  { %v730_v40 = vadd.f32 1.0, %v3222_v39 }
 0x950   :  { %3223 = vrcp.f32 %v730_v40 }
 0x95d   :  { %v3224_v41 = vpop.eup %3223 }
 0x95e   :  { %v734_v44 = vmul.f32 %v3224_v41, %v3580_v52 }
 0x9be   :  { %v737_v42 = vpop.permute.xlu1 %736 }
 0x9bf   :  { %v739_v43 = vmul.f32 %v3224_v41, %v737_v42 }
 0x9c1   :  { %741 = vrot.lane.b32.xlu0 %v739_v43, %s3403_s28 }
 0xa33   :  { %v742_v45 = vpop.permute.xlu0 %741 }
 0xa34   :  { %v3635_v46 = vadd.f32 %v742_v45, %v734_v44 }
 0xa36   :  { %3225 = vtanh.f32 %v3635_v46 }
 0xa43   :  { %v3226_v47 = vpop.eup %3225 }
 0xa44   :  { %747 = vrot.lane.b32.xlu1 %v3226_v47, %s3402_s27 }
 0xab6   :  { %v748_v48 = vpop.permute.xlu1 %747 }
 0xab7   :  { %v3639_v49 = vmul.f32 %v3224_v41, %v748_v48 }
 0xab9   :  { %752 = vrot.lane.b32.xlu1 %v3639_v49, %s3403_s28 }
 0xabd   :  { %828 = vrot.lane.b32.xlu1 %v3635_v46, %s3404_s29 }
 0xb2b   :  { %v753_v50 = vpop.permute.xlu1 %752 }
 0xb2c   :  { %2840 = vmatmul.mubr.msk.f32.vlgmr.msra.gmra.mxu0 %vm75_vm1, %v753_v50 }
 0xb2d   :  { %3039 = vmatpush3.msra.mxu0 %v3513_v13  ;;  %3046 = vmatprep.mubr.msk.f32.mxu0 %vm3401_vm0, %v3400_v0 }
 0xb2e   :  { %3040 = vmatprep.subr.mxu0 %v3400_v0 }
 0xb2f   :  { %v829_v51 = vpop.permute.xlu1 %828  ;;  %3041 = vmatpush3.msra.mxu0 %v3518_v14 }
 0xb30   :  { %3036 = vmatmul.mubr.msk.f32.vlgmr.msra.gmra.mxu1 %vm75_vm1, %v829_v51  ;;  %3042 = vmatprep.subr.mxu0 %v3400_v0 }
 0xb31   :  { %3043 = vmatpush3.msra.mxu0 %v3525_v15  ;;  %3050 = vmatpush3.msk.msra.mxu1 %vm313_vm3, %v3557_v33 }
 0xb32   :  { %3044 = vmatprep.subr.mxu0 %v3400_v0  ;;  %3051 = vmatprep.mubr.msk.f32.mxu1 %vm3401_vm0, %v3400_v0 }
 0xb33   :  { %3045 = vmatpush3.msra.mxu0 %v3532_v16  ;;  %1118 = vmatprep.subr.mxu1 %v3451_v1 }
 0xb34   :  { %3054 = vmatprep.subr.mxu0 %v3400_v0 }
 0xbec   :  { %v822_v52 = vpop.f32.mrf.mxu0 }
 0xbee   :  { %v824_v53 = vpop.f32.mrf.mxu0 }
 0xbf0   :  { %v898_v54 = vpop.f32.mrf.mxu1 }
 0xbf1   :  { %v902_v55 = vadd.f32 %v898_v54, %v824_v53 }
 0xbf2   :  { %v3037_v57 = vpop.f32.mrf.mxu1 }
 0xbf3   :  { %v903_v58 = vadd.f32 %v902_v55, %v3538_v20 }
 0xbf5   :  { %3227 = vtanh.f32 %v903_v58 }
 0xc02   :  { %v3228_v59 = vpop.eup %3227 }
 0xc03   :  { %3047 = vmatmul.mubr.msk.f32.vlgmr.msra.gmra.mxu0 %vm75_vm1, %v3228_v59 }
 0xc04   :  { %3055 = vmatpush3.msra.mxu0 %v3458_v3  ;;  %3062 = vmatprep.mubr.msk.f32.mxu0 %vm3401_vm0, %v3400_v0 }
 0xc05   :  { %3056 = vmatprep.subr.mxu0 %v3400_v0 }
 0xc06   :  { %3057 = vmatpush3.msra.mxu0 %v3469_v6 }
 0xc07   :  { %3058 = vmatprep.subr.mxu0 %v3400_v0 }
 0xc08   :  { %3059 = vmatpush3.msra.mxu0 %v3478_v8 }
 0xc09   :  { %3060 = vmatprep.subr.mxu0 %v3400_v0 }
 0xc0a   :  { %3061 = vmatpush3.msra.mxu0 %v3491_v11 }
 0xc0b   :  { %3076 = vmatprep.subr.mxu0 %v3400_v0 }
 0xcc3   :  { %v974_v60 = vpop.f32.mrf.mxu0 }
 0xcc4   :  { %v978_v61 = vsel %vm296_vm2, %v974_v60, -inf }
 0xcc5   :  { %979 = vmax.xlane.f32.xlu1 %v978_v61  ;;  %v3048_v62 = vpop.f32.mrf.mxu0 }
 0xd4e   :  { %v980_v63 = vpop.xlane.xlu1 %979 }
 0xd4f   :  { %v981_v17 = vsub.f32 %v974_v60, %v980_v63 }
 0xd51   :  { %v982_v18 = vmul.f32 1.442695, %v981_v17 }
 0xd53   :  { %3229 = vpow2.f32 %v982_v18 }
 0xd60   :  { %v3230_v19 = vpop.eup %3229 }
 0xd61   :  { %v984_v21 = vsel %vm296_vm2, %v3230_v19, 0.0 }
 0xd62   :  { %985 = vadd.xlane.f32.xlu0 %v984_v21 }
 0xdeb   :  { %v986_v22 = vpop.xlane.xlu0 %985 }
 0xdec   :  { %3231 = vrcp.f32 %v986_v22 }
 0xdf9   :  { %v3232_v23 = vpop.eup %3231 }
 0xdfa   :  { %v988_v24 = vmul.f32 %v3232_v23, %v3230_v19 }
 0xdfc   :  { %v989_v25 = vmul.f32 %v988_v24, %v974_v60 }
 0xdfe   :  { %3052 = vmatmul.mubr.msk.f32.vlgmr.msra.gmra.mxu1 %vm309_vm4, %v989_v25 }
 0xdff   :  { %1119 = vmatpush1.msra.mxu1 %v3453_v2  ;;  %1158 = vmatprep.mubr.f32.mxu1 %v3400_v0 }
 0xe00   :  { %1120 = vmatprep.subr.mxu1 %v3462_v4 }
 0xe01   :  { %1121 = vmatpush1.msra.mxu1 %v3464_v5 }
 0xe02   :  { %1122 = vmatprep.subr.mxu1 %v3473_v7 }
 0xe03   :  { %1123 = vmatpush1.msra.mxu1 %v3482_v9 }
 0xe04   :  { %1124 = vmatprep.subr.mxu1 %v3486_v10 }
 0xe05   :  { %1125 = vmatpush1.msra.mxu1 %v3495_v12 }
 0xe06   :  { %3065 = vmatprep.subr.mxu1 %v3400_v0 }
 0xebe   :  { %v1059_v26 = vpop.f32.mrf.mxu1 }
 0xebf   :  { %v1063_v27 = vadd.f32 %v1059_v26, %v822_v52 }
 0xec0   :  { %v3053_v28 = vpop.f32.mrf.mxu1 }
 0xec1   :  { %v1064_v29 = vadd.f32 %v3575_v38, %v1063_v27 }
 0xec3   :  { %3233 = vtanh.f32 %v1064_v29  ;;  %v2845_v31 = vmul.f32 -1.442695, %v1064_v29 }
 0xec5   :  { %3235 = vpow2.f32 %v2845_v31 }
 0xed0   :  { %v3234_v30 = vpop.eup %3233 }
 0xed1   :  { %1074 = vrot.lane.b32.xlu0 %v3234_v30, %s3402_s27 }
 0xed2   :  { %v3236_v32 = vpop.eup %3235 }
 0xed3   :  { %v1068_v34 = vadd.f32 1.0, %v3236_v32 }
 0xed5   :  { %3237 = vrcp.f32 %v1068_v34 }
 0xee2   :  { %v3238_v35 = vpop.eup %3237 }
 0xee3   :  { %v1072_v39 = vmul.f32 %v3238_v35, %v3635_v46 }
 0xf43   :  { %v1075_v36 = vpop.permute.xlu0 %1074 }
 0xf44   :  { %v1077_v37 = vmul.f32 %v3238_v35, %v1075_v36 }
 0xf46   :  { %1079 = vrot.lane.b32.xlu1 %v1077_v37, %s3403_s28 }
 0xfb8   :  { %v1080_v40 = vpop.permute.xlu1 %1079 }
 0xfb9   :  { %v3690_v41 = vadd.f32 %v1080_v40, %v1072_v39 }
 0xfbb   :  { %3239 = vtanh.f32 %v3690_v41 }
 0xfc8   :  { %v3240_v42 = vpop.eup %3239 }
 0xfc9   :  { %1085 = vrot.lane.b32.xlu1 %v3240_v42, %s3402_s27 }
 0xfcd   :  { %1166 = vrot.lane.b32.xlu1 %v3690_v41, %s3404_s29 }
0x103b   :  { %v1086_v43 = vpop.permute.xlu1 %1085 }
0x103c   :  { %v3696_v44 = vmul.f32 %v3238_v35, %v1086_v43 }
0x103e   :  { %1090 = vrot.lane.b32.xlu0 %v3696_v44, %s3403_s28 }
0x103f   :  { %v1167_v45 = vpop.permute.xlu1 %1166 }
0x1040   :  { %3063 = vmatmul.mubr.msk.f32.vlgmr.msra.gmra.mxu0 %vm75_vm1, %v1167_v45 }
0x1041   :  { %3077 = vmatpush3.msk.msra.mxu0 %vm313_vm3, %v3557_v33  ;;  %3078 = vmatprep.mubr.msk.f32.mxu0 %vm3401_vm0, %v3400_v0 }
0x1042   :  { %1456 = vmatprep.subr.mxu0 %v3451_v1 }
0x10b0   :  { %v1091_v46 = vpop.permute.xlu0 %1090 }
0x10b1   :  { %2846 = vmatmul.mubr.msk.f32.vlgmr.msra.gmra.mxu1 %vm75_vm1, %v1091_v46 }
0x10b2   :  { %3066 = vmatpush3.msra.mxu1 %v3513_v13  ;;  %3073 = vmatprep.mubr.msk.f32.mxu1 %vm3401_vm0, %v3400_v0 }
0x10b3   :  { %3067 = vmatprep.subr.mxu1 %v3400_v0 }
0x10b4   :  { %3068 = vmatpush3.msra.mxu1 %v3518_v14 }
0x10b5   :  { %3069 = vmatprep.subr.mxu1 %v3400_v0 }
0x10b6   :  { %3070 = vmatpush3.msra.mxu1 %v3525_v15 }
0x10b7   :  { %3071 = vmatprep.subr.mxu1 %v3400_v0 }
0x10b8   :  { %3072 = vmatpush3.msra.mxu1 %v3532_v16 }
0x10b9   :  { %3081 = vmatprep.subr.mxu1 %v3400_v0 }
0x1100   :  { %v1236_v47 = vpop.f32.mrf.mxu0 }
0x1102   :  { %v3064_v48 = vpop.f32.mrf.mxu0 }
0x1171   :  { %v1160_v50 = vpop.f32.mrf.mxu1 }
0x1173   :  { %v1162_v51 = vpop.f32.mrf.mxu1 }
0x1174   :  { %v1240_v52 = vadd.f32 %v1236_v47, %v1162_v51 }
0x1176   :  { %v1241_v53 = vadd.f32 %v1240_v52, %v3538_v20 }
0x1178   :  { %3241 = vtanh.f32 %v1241_v53 }
0x1185   :  { %v3242_v54 = vpop.eup %3241 }
0x1186   :  { %3074 = vmatmul.mubr.msk.f32.vlgmr.msra.gmra.mxu1 %vm75_vm1, %v3242_v54 }
0x1187   :  { %3082 = vmatpush3.msra.mxu1 %v3458_v3  ;;  %3089 = vmatprep.mubr.msk.f32.mxu1 %vm3401_vm0, %v3400_v0 }
0x1188   :  { %3083 = vmatprep.subr.mxu1 %v3400_v0 }
0x1189   :  { %3084 = vmatpush3.msra.mxu1 %v3469_v6 }
0x118a   :  { %3085 = vmatprep.subr.mxu1 %v3400_v0 }
0x118b   :  { %3086 = vmatpush3.msra.mxu1 %v3478_v8 }
0x118c   :  { %3087 = vmatprep.subr.mxu1 %v3400_v0 }
0x118d   :  { %3088 = vmatpush3.msra.mxu1 %v3491_v11 }
0x118e   :  { %3103 = vmatprep.subr.mxu1 %v3400_v0 }
0x1246   :  { %v1312_v55 = vpop.f32.mrf.mxu1 }
0x1247   :  { %v1316_v57 = vsel %vm296_vm2, %v1312_v55, -inf }
0x1248   :  { %1317 = vmax.xlane.f32.xlu0 %v1316_v57  ;;  %v3075_v58 = vpop.f32.mrf.mxu1 }
0x12d1   :  { %v1318_v59 = vpop.xlane.xlu0 %1317 }
0x12d2   :  { %v1319_v60 = vsub.f32 %v1312_v55, %v1318_v59 }
0x12d4   :  { %v1320_v61 = vmul.f32 1.442695, %v1319_v60 }
0x12d6   :  { %3243 = vpow2.f32 %v1320_v61 }
0x12e3   :  { %v3244_v62 = vpop.eup %3243 }
0x12e4   :  { %v1322_v63 = vsel %vm296_vm2, %v3244_v62, 0.0 }
0x12e5   :  { %1323 = vadd.xlane.f32.xlu1 %v1322_v63 }
0x136e   :  { %v1324_v17 = vpop.xlane.xlu1 %1323 }
0x136f   :  { %3245 = vrcp.f32 %v1324_v17 }
0x137c   :  { %v3246_v18 = vpop.eup %3245 }
0x137d   :  { %v1326_v19 = vmul.f32 %v3246_v18, %v3244_v62 }
0x137f   :  { %v1327_v21 = vmul.f32 %v1326_v19, %v1312_v55 }
0x1381   :  { %3079 = vmatmul.mubr.msk.f32.vlgmr.msra.gmra.mxu0 %vm309_vm4, %v1327_v21 }
0x1382   :  { %1457 = vmatpush1.msra.mxu0 %v3453_v2  ;;  %1496 = vmatprep.mubr.f32.mxu0 %v3400_v0 }
0x1383   :  { %1458 = vmatprep.subr.mxu0 %v3462_v4 }
0x1384   :  { %1459 = vmatpush1.msra.mxu0 %v3464_v5 }
0x1385   :  { %1460 = vmatprep.subr.mxu0 %v3473_v7 }
0x1386   :  { %1461 = vmatpush1.msra.mxu0 %v3482_v9 }
0x1387   :  { %1462 = vmatprep.subr.mxu0 %v3486_v10 }
0x1388   :  { %1463 = vmatpush1.msra.mxu0 %v3495_v12 }
0x1389   :  { %3092 = vmatprep.subr.mxu0 %v3400_v0 }
0x1441   :  { %v1397_v22 = vpop.f32.mrf.mxu0 }
0x1442   :  { %v1401_v23 = vadd.f32 %v1397_v22, %v1160_v50 }
0x1443   :  { %v3080_v24 = vpop.f32.mrf.mxu0 }
0x1444   :  { %v1402_v25 = vadd.f32 %v3575_v38, %v1401_v23 }
0x1446   :  { %3247 = vtanh.f32 %v1402_v25  ;;  %v2851_v27 = vmul.f32 -1.442695, %v1402_v25 }
0x1448   :  { %3249 = vpow2.f32 %v2851_v27 }
0x1453   :  { %v3248_v26 = vpop.eup %3247 }
0x1454   :  { %1412 = vrot.lane.b32.xlu0 %v3248_v26, %s3402_s27 }
0x1455   :  { %v3250_v28 = vpop.eup %3249 }
0x1456   :  { %v1406_v29 = vadd.f32 1.0, %v3250_v28 }
0x1458   :  { %3251 = vrcp.f32 %v1406_v29 }
0x1465   :  { %v3252_v30 = vpop.eup %3251 }
0x1466   :  { %v1410_v34 = vmul.f32 %v3252_v30, %v3690_v41 }
0x14c6   :  { %v1413_v31 = vpop.permute.xlu0 %1412 }
0x14c7   :  { %v1415_v32 = vmul.f32 %v3252_v30, %v1413_v31 }
0x14c9   :  { %1417 = vrot.lane.b32.xlu1 %v1415_v32, %s3403_s28 }
0x153b   :  { %v1418_v35 = vpop.permute.xlu1 %1417 }
0x153c   :  { %v3745_v36 = vadd.f32 %v1418_v35, %v1410_v34 }
0x153e   :  { %3253 = vtanh.f32 %v3745_v36 }
0x154b   :  { %v3254_v37 = vpop.eup %3253 }
0x154c   :  { %1423 = vrot.lane.b32.xlu0 %v3254_v37, %s3402_s27 }
0x1550   :  { %1504 = vrot.lane.b32.xlu0 %v3745_v36, %s3404_s29 }
0x15be   :  { %v1424_v39 = vpop.permute.xlu0 %1423 }
0x15bf   :  { %v3751_v40 = vmul.f32 %v3252_v30, %v1424_v39 }
0x15c1   :  { %1428 = vrot.lane.b32.xlu1 %v3751_v40, %s3403_s28 }
0x15c2   :  { %v1505_v42 = vpop.permute.xlu0 %1504 }
0x15c3   :  { %3090 = vmatmul.mubr.msk.f32.vlgmr.msra.gmra.mxu1 %vm75_vm1, %v1505_v42 }
0x15c4   :  { %3104 = vmatpush3.msk.msra.mxu1 %vm313_vm3, %v3557_v33  ;;  %3105 = vmatprep.mubr.msk.f32.mxu1 %vm3401_vm0, %v3400_v0 }
0x15c5   :  { %1794 = vmatprep.subr.mxu1 %v3451_v1 }
0x1633   :  { %v1429_v41 = vpop.permute.xlu1 %1428 }
0x1634   :  { %2852 = vmatmul.mubr.msk.f32.vlgmr.msra.gmra.mxu0 %vm75_vm1, %v1429_v41 }
0x1635   :  { %3093 = vmatpush3.msra.mxu0 %v3513_v13  ;;  %3100 = vmatprep.mubr.msk.f32.mxu0 %vm3401_vm0, %v3400_v0 }
0x1636   :  { %3094 = vmatprep.subr.mxu0 %v3400_v0 }
0x1637   :  { %3095 = vmatpush3.msra.mxu0 %v3518_v14 }
0x1638   :  { %3096 = vmatprep.subr.mxu0 %v3400_v0 }
0x1639   :  { %3097 = vmatpush3.msra.mxu0 %v3525_v15 }
0x163a   :  { %3098 = vmatprep.subr.mxu0 %v3400_v0 }
0x163b   :  { %3099 = vmatpush3.msra.mxu0 %v3532_v16 }
0x163c   :  { %3108 = vmatprep.subr.mxu0 %v3400_v0 }
0x1683   :  { %v1574_v43 = vpop.f32.mrf.mxu1 }
0x1685   :  { %v3091_v45 = vpop.f32.mrf.mxu1 }
0x16f4   :  { %v1498_v46 = vpop.f32.mrf.mxu0 }
0x16f6   :  { %v1500_v47 = vpop.f32.mrf.mxu0 }
0x16f7   :  { %v1578_v48 = vadd.f32 %v1574_v43, %v1500_v47  ;;  %v3846_v47 = vld [vmem:[#allocation5 + $0x28] sm:$0xff] }
0x16f9   :  { %v1579_v50 = vadd.f32 %v1578_v48, %v3538_v20  ;;  %v3849_v48 = vld [vmem:[#allocation5 + $0x20] sm:$0xff] }
0x16fb   :  { %3255 = vtanh.f32 %v1579_v50  ;;  %v3852_v50 = vld [vmem:[#allocation5 + $0x18] sm:$0xff] }
0x1708   :  { %v3256_v51 = vpop.eup %3255 }
0x1709   :  { %3101 = vmatmul.mubr.msk.f32.vlgmr.msra.gmra.mxu0 %vm75_vm1, %v3256_v51  ;;  %v3855_v51 = vld [vmem:[#allocation5 + $0x10] sm:$0xff] }
0x170a   :  { %3109 = vmatpush3.msra.mxu0 %v3458_v3  ;;  %3116 = vmatprep.mubr.msk.f32.mxu0 %vm3401_vm0, %v3400_v0 }
0x170b   :  { %3110 = vmatprep.subr.mxu0 %v3400_v0 }
0x170c   :  { %3111 = vmatpush3.msra.mxu0 %v3469_v6 }
0x170d   :  { %3112 = vmatprep.subr.mxu0 %v3400_v0 }
0x170e   :  { %3113 = vmatpush3.msra.mxu0 %v3478_v8 }
0x170f   :  { %3114 = vmatprep.subr.mxu0 %v3400_v0 }
0x1710   :  { %3115 = vmatpush3.msra.mxu0 %v3491_v11 }
0x1711   :  { %3130 = vmatprep.subr.mxu0 %v3400_v0 }
0x17c9   :  { %v1650_v52 = vpop.f32.mrf.mxu0 }
0x17ca   :  { %v1654_v53 = vsel %vm296_vm2, %v1650_v52, -inf }
0x17cb   :  { %1655 = vmax.xlane.f32.xlu1 %v1654_v53  ;;  %v3102_v54 = vpop.f32.mrf.mxu0 }
0x1854   :  { %v1656_v55 = vpop.xlane.xlu1 %1655 }
0x1855   :  { %v1657_v57 = vsub.f32 %v1650_v52, %v1656_v55 }
0x1857   :  { %v1658_v58 = vmul.f32 1.442695, %v1657_v57 }
0x1859   :  { %3257 = vpow2.f32 %v1658_v58 }
0x1866   :  { %v3258_v59 = vpop.eup %3257 }
0x1867   :  { %v1660_v60 = vsel %vm296_vm2, %v3258_v59, 0.0 }
0x1868   :  { %1661 = vadd.xlane.f32.xlu0 %v1660_v60 }
0x18f1   :  { %v1662_v61 = vpop.xlane.xlu0 %1661 }
0x18f2   :  { %3259 = vrcp.f32 %v1662_v61 }
0x18ff   :  { %v3260_v62 = vpop.eup %3259 }
0x1900   :  { %v1664_v63 = vmul.f32 %v3260_v62, %v3258_v59 }
0x1902   :  { %v1665_v17 = vmul.f32 %v1664_v63, %v1650_v52 }
0x1904   :  { %3106 = vmatmul.mubr.msk.f32.vlgmr.msra.gmra.mxu1 %vm309_vm4, %v1665_v17 }
0x1905   :  { %1795 = vmatpush1.msra.mxu1 %v3453_v2  ;;  %1834 = vmatprep.mubr.f32.mxu1 %v3400_v0 }
0x1906   :  { %1796 = vmatprep.subr.mxu1 %v3462_v4 }
0x1907   :  { %1797 = vmatpush1.msra.mxu1 %v3464_v5 }
0x1908   :  { %1798 = vmatprep.subr.mxu1 %v3473_v7 }
0x1909   :  { %1799 = vmatpush1.msra.mxu1 %v3482_v9 }
0x190a   :  { %1800 = vmatprep.subr.mxu1 %v3486_v10 }
0x190b   :  { %1801 = vmatpush1.msra.mxu1 %v3495_v12 }
0x190c   :  { %3119 = vmatprep.subr.mxu1 %v3400_v0 }
0x19c4   :  { %v1735_v18 = vpop.f32.mrf.mxu1 }
0x19c5   :  { %v1739_v19 = vadd.f32 %v1735_v18, %v1498_v46  ;;  %v3842_v46 = vld [vmem:[#allocation5 + $0x30] sm:$0xff] }
0x19c6   :  { %v3107_v21 = vpop.f32.mrf.mxu1 }
0x19c7   :  { %v1740_v2 = vadd.f32 %v3575_v38, %v1739_v19 }
0x19c9   :  { %3261 = vtanh.f32 %v1740_v2  ;;  %v2857_v4 = vmul.f32 -1.442695, %v1740_v2  ;;  %v3316_v2 = vld [vmem:[#allocation5 + $0x38] sm:$0xff] }
0x19cb   :  { %3263 = vpow2.f32 %v2857_v4  ;;  %v3884_v4 = vld [vmem:[%s4008_s3 + $0x18] sm:$0xff] }
0x19d6   :  { %v3262_v22 = vpop.eup %3261 }
0x19d7   :  { %1750 = vrot.lane.b32.xlu0 %v3262_v22, %s3402_s27 }
0x19d8   :  { %v3264_v5 = vpop.eup %3263 }
0x19d9   :  { %v1744_v7 = vadd.f32 1.0, %v3264_v5  ;;  %v3900_v5 = vld [vmem:[%s4008_s3 + $0x8] sm:$0xff] }
0x19db   :  { %3265 = vrcp.f32 %v1744_v7  ;;  %v3907_v7 = vld [vmem:[%s4008_s3] sm:$0xff] }
0x19e8   :  { %v3266_v9 = vpop.eup %3265 }
0x19e9   :  { %v1748_v25 = vmul.f32 %v3266_v9, %v3745_v36 }
0x1a49   :  { %v1751_v23 = vpop.permute.xlu0 %1750 }
0x1a4a   :  { %v1753_v24 = vmul.f32 %v3266_v9, %v1751_v23 }
0x1a4c   :  { %1755 = vrot.lane.b32.xlu1 %v1753_v24, %s3403_s28 }
0x1abe   :  { %v1756_v26 = vpop.permute.xlu1 %1755 }
0x1abf   :  { %v3800_v27 = vadd.f32 %v1756_v26, %v1748_v25 }
0x1ac1   :  { %3267 = vtanh.f32 %v3800_v27 }
0x1ace   :  { %v3268_v28 = vpop.eup %3267 }
0x1acf   :  { %1761 = vrot.lane.b32.xlu1 %v3268_v28, %s3402_s27 }
0x1ad3   :  { %1842 = vrot.lane.b32.xlu1 %v3800_v27, %s3404_s29 }
0x1b41   :  { %v1762_v29 = vpop.permute.xlu1 %1761 }
0x1b42   :  { %v1764_v30 = vmul.f32 %v3266_v9, %v1762_v29 }
0x1b44   :  { %1766 = vrot.lane.b32.xlu0 %v1764_v30, %s3403_s28  ;;  %v3322_v30 = vld [vmem:[%s4007_s2 + $0x18] sm:$0xff] }
0x1b45   :  { %v1843_v31 = vpop.permute.xlu1 %1842 }
0x1b46   :  { %3117 = vmatmul.mubr.msk.f32.vlgmr.msra.gmra.mxu0 %vm75_vm1, %v1843_v31  ;;  %v3323_v31 = vld [vmem:[%s4007_s2 + $0x10] sm:$0xff] }
0x1b47   :  { %3131 = vmatpush3.msk.msra.mxu0 %vm313_vm3, %v3557_v33  ;;  %3132 = vmatprep.mubr.msk.f32.mxu0 %vm3401_vm0, %v3400_v0 }
0x1b48   :  { %2132 = vmatprep.subr.mxu0 %v3451_v1 }
0x1bb6   :  { %v3813_v32 = vpop.permute.xlu0 %1766 }
0x1bb7   :  { %2858 = vmatmul.mubr.msk.f32.vlgmr.msra.gmra.mxu1 %vm75_vm1, %v3813_v32 }
0x1bb8   :  { %3120 = vmatpush3.msra.mxu1 %v3513_v13  ;;  %3127 = vmatprep.mubr.msk.f32.mxu1 %vm3401_vm0, %v3400_v0 }
0x1bb9   :  { %3121 = vmatprep.subr.mxu1 %v3400_v0 }
0x1bba   :  { %3122 = vmatpush3.msra.mxu1 %v3518_v14 }
0x1bbb   :  { %3123 = vmatprep.subr.mxu1 %v3400_v0 }
0x1bbc   :  { %3124 = vmatpush3.msra.mxu1 %v3525_v15 }
0x1bbd   :  { %3125 = vmatprep.subr.mxu1 %v3400_v0 }
0x1bbe   :  { %3126 = vmatpush3.msra.mxu1 %v3532_v16 }
0x1bbf   :  { %3135 = vmatprep.subr.mxu1 %v3400_v0 }
0x1c06   :  { %v1912_v1 = vpop.f32.mrf.mxu0 }
0x1c08   :  { %v3118_v34 = vpop.f32.mrf.mxu0 }
0x1c09   :  { %v3325_v34 = vld [vmem:[%s4007_s2] sm:$0xff] }
0x1c77   :  { %v1836_v13 = vpop.f32.mrf.mxu1 }
0x1c79   :  { %v1838_v35 = vpop.f32.mrf.mxu1 }
0x1c7a   :  { %v1916_v36 = vadd.f32 %v1912_v1, %v1838_v35  ;;  %v3324_v1 = vld [vmem:[%s4007_s2 + $0x8] sm:$0xff] }
0x1c7c   :  { %v1917_v37 = vadd.f32 %v1916_v36, %v3538_v20 }
0x1c7e   :  { %3269 = vtanh.f32 %v1917_v37 }
0x1c8b   :  { %v3270_v39 = vpop.eup %3269 }
0x1c8c   :  { %3128 = vmatmul.mubr.msk.f32.vlgmr.msra.gmra.mxu1 %vm75_vm1, %v3270_v39 }
0x1c8d   :  { %3136 = vmatpush3.msra.mxu1 %v3458_v3  ;;  %3143 = vmatprep.mubr.msk.f32.mxu1 %vm3401_vm0, %v3400_v0 }
0x1c8e   :  { %3137 = vmatprep.subr.mxu1 %v3400_v0 }
0x1c8f   :  { %3138 = vmatpush3.msra.mxu1 %v3469_v6 }
0x1c90   :  { %3139 = vmatprep.subr.mxu1 %v3400_v0 }
0x1c91   :  { %3140 = vmatpush3.msra.mxu1 %v3478_v8 }
0x1c92   :  { %3141 = vmatprep.subr.mxu1 %v3400_v0 }
0x1c93   :  { %3142 = vmatpush3.msra.mxu1 %v3491_v11 }
0x1c94   :  { %3157 = vmatprep.subr.mxu1 %v3400_v0 }
0x1d4c   :  { %v1988_v14 = vpop.f32.mrf.mxu1 }
0x1d4d   :  { %v1992_v3 = vsel %vm296_vm2, %v1988_v14, -inf }
0x1d4e   :  { %1993 = vmax.xlane.f32.xlu0 %v1992_v3  ;;  %v3129_v15 = vpop.f32.mrf.mxu1 }
0x1dd7   :  { %v1994_v16 = vpop.xlane.xlu0 %1993 }
0x1dd8   :  { %v1995_v20 = vsub.f32 %v1988_v14, %v1994_v16 }
0x1dda   :  { %v1996_v42 = vmul.f32 1.442695, %v1995_v20 }
0x1ddc   :  { %3271 = vpow2.f32 %v1996_v42 }
0x1de9   :  { %v3272_v6 = vpop.eup %3271 }
0x1dea   :  { %v1998_v41 = vsel %vm296_vm2, %v3272_v6, 0.0 }
0x1deb   :  { %1999 = vadd.xlane.f32.xlu1 %v1998_v41  ;;  %v3326_v41 = vld [vmem:[#allocation5 + $0x8] sm:$0xff] }
0x1e74   :  { %v2000_v8 = vpop.xlane.xlu1 %1999 }
0x1e75   :  { %3273 = vrcp.f32 %v2000_v8  ;;  %v3327_v8 = vld [vmem:[#allocation5] sm:$0xff] }
0x1e82   :  { %v3274_v43 = vpop.eup %3273 }
0x1e83   :  { %v2002_v45 = vmul.f32 %v3274_v43, %v3272_v6 }
0x1e85   :  { %v2003_v11 = vmul.f32 %v2002_v45, %v1988_v14 }
0x1e87   :  { %3133 = vmatmul.mubr.msk.f32.vlgmr.msra.gmra.mxu0 %vm309_vm4, %v2003_v11 }
0x1e88   :  { %2133 = vmatpush1.msra.mxu0 %v3842_v46  ;;  %2172 = vmatprep.mubr.f32.mxu0 %v3400_v0 }
0x1e89   :  { %2134 = vmatprep.subr.mxu0 %v3846_v47 }
0x1e8a   :  { %2135 = vmatpush1.msra.mxu0 %v3849_v48 }
0x1e8b   :  { %2136 = vmatprep.subr.mxu0 %v3852_v50 }
0x1e8c   :  { %2137 = vmatpush1.msra.mxu0 %v3855_v51 }
0x1e8d   :  { %2138 = vmatprep.subr.mxu0 %v3486_v10 }
0x1e8e   :  { %2139 = vmatpush1.msra.mxu0 %v3495_v12 }
0x1e8f   :  { %3146 = vmatprep.subr.mxu0 %v3400_v0 }
0x1f47   :  { %v2073_v52 = vpop.f32.mrf.mxu0 }
0x1f48   :  { %v2077_v53 = vadd.f32 %v2073_v52, %v1836_v13 }
0x1f49   :  { %v3134_v54 = vpop.f32.mrf.mxu0 }
0x1f4a   :  { %v2078_v55 = vadd.f32 %v3575_v38, %v2077_v53 }
0x1f4c   :  { %3275 = vtanh.f32 %v2078_v55  ;;  %v2863_v58 = vmul.f32 -1.442695, %v2078_v55 }
0x1f4e   :  { %3277 = vpow2.f32 %v2863_v58 }
0x1f59   :  { %v3276_v57 = vpop.eup %3275 }
0x1f5a   :  { %2088 = vrot.lane.b32.xlu0 %v3276_v57, %s3402_s27 }
0x1f5b   :  { %v3278_v59 = vpop.eup %3277 }
0x1f5c   :  { %v2082_v60 = vadd.f32 1.0, %v3278_v59 }
0x1f5e   :  { %3279 = vrcp.f32 %v2082_v60 }
0x1f6b   :  { %v3280_v61 = vpop.eup %3279 }
0x1f6c   :  { %v2086_v12 = vmul.f32 %v3280_v61, %v3800_v27  ;;  %v3911_v27 = vld [vmem:[#allocation2] sm:$0x3] }
0x1fcc   :  { %v2089_v10 = vpop.permute.xlu0 %2088 }
0x1fcd   :  { %v2091_v62 = vmul.f32 %v3280_v61, %v2089_v10 }
0x1fcf   :  { %2093 = vrot.lane.b32.xlu1 %v2091_v62, %s3403_s28 }
0x2041   :  { %v2094_v63 = vpop.permute.xlu1 %2093 }
0x2042   :  { %v3865_v17 = vadd.f32 %v2094_v63, %v2086_v12  ;;  %v3329_v12 = vld [vmem:[%s4009_s4] sm:$0xf]  ;;  %s3405_s4 = smov [#allocation7]  }
0x2043   :  { %s2819_s21 = sshll.u32 %s3405_s4, 4  ;;  %s2820_s21 = int_to_ptr.vmem [resolvable:$true] %s2819_s21 }
0x2044   :  { %3281 = vtanh.f32 %v3865_v17  ;;  %s3370_s22 = scalar_lea.vmem %s2820_s21, 64  ;;  %p3375_p11 = scmp.lt.s32.totalorder %s2820_s21, %s2820_s21 }
0x2045   :  { %p3371_p10 = scmp.ne.s32.totalorder %s2820_s21, %s3370_s22  ;;  %p3376_p12 = scmp.lt.s32.totalorder %s3370_s22, %s3370_s22 }
0x2047   :  { %p3377_p13 = por %p3376_p12, %p3375_p11 }
0x2049   :  { %p3378_p0 = pnand %p3377_p13, %p3371_p10 }
0x2051   :  { %v3282_v38 = vpop.eup %3281 }
0x2052   :  { %2099 = vrot.lane.b32.xlu0 %v3282_v38, %s3402_s27 }
0x2056   :  { %2180 = vrot.lane.b32.xlu0 %v3865_v17, %s3404_s29 }
0x20c4   :  { %v2100_v18 = vpop.permute.xlu0 %2099 }
0x20c5   :  { %v3871_v19 = vmul.f32 %v3280_v61, %v2100_v18 }
0x20c7   :  { %2104 = vrot.lane.b32.xlu1 %v3871_v19, %s3403_s28 }
0x20c8   :  { %v2181_v21 = vpop.permute.xlu0 %2180 }
0x20c9   :  { %3144 = vmatmul.mubr.msk.f32.vlgmr.msra.gmra.mxu1 %vm75_vm1, %v2181_v21 }
0x20ca   :  { %3158 = vmatpush3.msk.msra.mxu1 %vm313_vm3, %v3557_v33  ;;  %3159 = vmatprep.mubr.msk.f32.mxu1 %vm3401_vm0, %v3400_v0  ;;  %v3893_v33 = vld [vmem:[%s4008_s3 + $0x10] sm:$0xff] }
0x20cb   :  { %2470 = vmatprep.subr.mxu1 %v3316_v2 }
0x2139   :  { %v2105_v22 = vpop.permute.xlu1 %2104 }
0x213a   :  { %2864 = vmatmul.mubr.msk.f32.vlgmr.msra.gmra.mxu0 %vm75_vm1, %v2105_v22 }
0x213b   :  { %3147 = vmatpush3.msra.mxu0 %v3884_v4  ;;  %3154 = vmatprep.mubr.msk.f32.mxu0 %vm3401_vm0, %v3400_v0 }
0x213c   :  { %3148 = vmatprep.subr.mxu0 %v3400_v0 }
0x213d   :  { %3149 = vmatpush3.msra.mxu0 %v3893_v33 }
0x213e   :  { %3150 = vmatprep.subr.mxu0 %v3400_v0 }
0x213f   :  { %3151 = vmatpush3.msra.mxu0 %v3900_v5 }
0x2140   :  { %3152 = vmatprep.subr.mxu0 %v3400_v0 }
0x2141   :  { %3153 = vmatpush3.msra.mxu0 %v3907_v7 }
0x2142   :  { %3162 = vmatprep.subr.mxu0 %v3400_v0 }
0x2189   :  { %v2250_v9 = vpop.f32.mrf.mxu1 }
0x218b   :  { %v3145_v23 = vpop.f32.mrf.mxu1 }
0x21fa   :  { %v2174_v24 = vpop.f32.mrf.mxu0 }
0x21fc   :  { %v2176_v25 = vpop.f32.mrf.mxu0 }
0x21fd   :  { %v2254_v26 = vadd.f32 %v2250_v9, %v2176_v25 }
0x21ff   :  { %v2255_v28 = vadd.f32 %v3911_v27, %v2254_v26 }
0x2201   :  { %3283 = vtanh.f32 %v2255_v28 }
0x220e   :  { %v3284_v29 = vpop.eup %3283 }
0x220f   :  { %3155 = vmatmul.mubr.msk.f32.vlgmr.msra.gmra.mxu0 %vm75_vm1, %v3284_v29 }
0x2210   :  { %3163 = vmatpush3.msra.mxu0 %v3322_v30  ;;  %3170 = vmatprep.mubr.msk.f32.mxu0 %vm3401_vm0, %v3400_v0 }
0x2211   :  { %3164 = vmatprep.subr.mxu0 %v3400_v0 }
0x2212   :  { %3165 = vmatpush3.msra.mxu0 %v3323_v31 }
0x2213   :  { %3166 = vmatprep.subr.mxu0 %v3400_v0 }
0x2214   :  { %3167 = vmatpush3.msra.mxu0 %v3324_v1 }
0x2215   :  { %3168 = vmatprep.subr.mxu0 %v3400_v0 }
0x2216   :  { %3169 = vmatpush3.msra.mxu0 %v3325_v34 }
0x2217   :  { %3184 = vmatprep.subr.mxu0 %v3400_v0 }
0x22cf   :  { %v2326_v13 = vpop.f32.mrf.mxu0 }
0x22d0   :  { %v2330_v35 = vsel %vm296_vm2, %v2326_v13, -inf }
0x22d1   :  { %2331 = vmax.xlane.f32.xlu1 %v2330_v35  ;;  %v3156_v36 = vpop.f32.mrf.mxu0 }
0x235a   :  { %v2332_v37 = vpop.xlane.xlu1 %2331 }
0x235b   :  { %v2333_v39 = vsub.f32 %v2326_v13, %v2332_v37 }
0x235d   :  { %v2334_v14 = vmul.f32 1.442695, %v2333_v39 }
0x235f   :  { %3285 = vpow2.f32 %v2334_v14 }
0x236c   :  { %v3286_v3 = vpop.eup %3285 }
0x236d   :  { %v2336_v15 = vsel %vm296_vm2, %v3286_v3, 0.0 }
0x236e   :  { %2337 = vadd.xlane.f32.xlu0 %v2336_v15 }
0x23f7   :  { %v2338_v16 = vpop.xlane.xlu0 %2337 }
0x23f8   :  { %3287 = vrcp.f32 %v2338_v16 }
0x2405   :  { %v3288_v20 = vpop.eup %3287 }
0x2406   :  { %v2340_v42 = vmul.f32 %v3288_v20, %v3286_v3 }
0x2408   :  { %v2341_v6 = vmul.f32 %v2340_v42, %v2326_v13 }
0x240a   :  { %3160 = vmatmul.mubr.msk.f32.vlgmr.msra.gmra.mxu1 %vm309_vm4, %v2341_v6 }
0x240b   :  { %2471 = vmatpush1.msra.mxu1 %v3842_v46  ;;  %2510 = vmatprep.mubr.f32.mxu1 %v3400_v0  ;;  %v3946_v46 = vld [vmem:[%s4010_s5] ss:$0 sm:$0xff] }
0x240c   :  { %2472 = vmatprep.subr.mxu1 %v3846_v47 }
0x240d   :  { %2473 = vmatpush1.msra.mxu1 %v3849_v48 }
0x240e   :  { %2474 = vmatprep.subr.mxu1 %v3852_v50 }
0x240f   :  { %2475 = vmatpush1.msra.mxu1 %v3855_v51 }
0x2410   :  { %2476 = vmatprep.subr.mxu1 %v3326_v41 }
0x2411   :  { %2477 = vmatpush1.msra.mxu1 %v3327_v8 }
0x2412   :  { %3173 = vmatprep.subr.mxu1 %v3400_v0 }
0x24ca   :  { %v2411_v43 = vpop.f32.mrf.mxu1 }
0x24cb   :  { %v2415_v45 = vadd.f32 %v2411_v43, %v2174_v24 }
0x24cc   :  { %v3161_v11 = vpop.f32.mrf.mxu1 }
0x24cd   :  { %v2416_v47 = vadd.f32 %v3946_v46, %v2415_v45 }
0x24cf   :  { %3289 = vtanh.f32 %v2416_v47  ;;  %v2869_v50 = vmul.f32 -1.442695, %v2416_v47 }
0x24d1   :  { %3291 = vpow2.f32 %v2869_v50 }
0x24dc   :  { %v3290_v48 = vpop.eup %3289 }
0x24dd   :  { %2426 = vrot.lane.b32.xlu0 %v3290_v48, %s3402_s27 }
0x24de   :  { %v3292_v51 = vpop.eup %3291 }
0x24df   :  { %v2420_v52 = vadd.f32 1.0, %v3292_v51 }
0x24e1   :  { %3293 = vrcp.f32 %v2420_v52 }
0x24ee   :  { %v3294_v53 = vpop.eup %3293 }
0x24ef   :  { %v2424_v57 = vmul.f32 %v3294_v53, %v3865_v17 }
0x254f   :  { %v2427_v54 = vpop.permute.xlu0 %2426 }
0x2550   :  { %v2429_v55 = vmul.f32 %v3294_v53, %v2427_v54 }
0x2552   :  { %2431 = vrot.lane.b32.xlu1 %v2429_v55, %s3403_s28 }
0x25c4   :  { %v2432_v58 = vpop.permute.xlu1 %2431 }
0x25c5   :  { %v3952_v59 = vadd.f32 %v2432_v58, %v2424_v57 }
0x25c7   :  { %3295 = vtanh.f32 %v3952_v59 }
0x25d4   :  { %v3296_v60 = vpop.eup %3295 }
0x25d5   :  { %2437 = vrot.lane.b32.xlu1 %v3296_v60, %s3402_s27 }
0x25d9   :  { %2518 = vrot.lane.b32.xlu1 %v3952_v59, %s3404_s29 }
0x2647   :  { %v2438_v61 = vpop.permute.xlu1 %2437 }
0x2648   :  { %v3958_v10 = vmul.f32 %v3294_v53, %v2438_v61 }
0x264a   :  { %2442 = vrot.lane.b32.xlu0 %v3958_v10, %s3403_s28 }
0x264b   :  { %v2519_v62 = vpop.permute.xlu1 %2518 }
0x264c   :  { %3171 = vmatmul.mubr.msk.f32.vlgmr.msra.gmra.mxu0 %vm75_vm1, %v2519_v62 }
0x264d   :  { %3185 = vmatpush3.msk.msra.mxu0 %vm313_vm3, %v3329_v12  ;;  %3186 = vmatprep.mubr.msk.f32.mxu0 %vm3401_vm0, %v3400_v0 }
0x26bc   :  { %v2443_v63 = vpop.permute.xlu0 %2442 }
0x26bd   :  { %2870 = vmatmul.mubr.msk.f32.vlgmr.msra.gmra.mxu1 %vm75_vm1, %v2443_v63 }
0x26be   :  { %3174 = vmatpush3.msra.mxu1 %v3884_v4  ;;  %3181 = vmatprep.mubr.msk.f32.mxu1 %vm3401_vm0, %v3400_v0 }
0x26bf   :  { %3175 = vmatprep.subr.mxu1 %v3400_v0 }
0x26c0   :  { %3176 = vmatpush3.msra.mxu1 %v3893_v33 }
0x26c1   :  { %3177 = vmatprep.subr.mxu1 %v3400_v0 }
0x26c2   :  { %3178 = vmatpush3.msra.mxu1 %v3900_v5 }
0x26c3   :  { %3179 = vmatprep.subr.mxu1 %v3400_v0 }
0x26c4   :  { %3180 = vmatpush3.msra.mxu1 %v3907_v7 }
0x270c   :  { %v2588_v17 = vpop.f32.mrf.mxu0 }
0x270e   :  { %v3172_v38 = vpop.f32.mrf.mxu0 }
0x277d   :  { %v2512_v18 = vpop.f32.mrf.mxu1 }
0x277f   :  { %v2514_v21 = vpop.f32.mrf.mxu1 }
0x2780   :  { %v2592_v2 = vadd.f32 %v2588_v17, %v2514_v21 }
0x2782   :  { %v2593_v22 = vadd.f32 %v3911_v27, %v2592_v2 }
0x2784   :  { %3297 = vtanh.f32 %v2593_v22 }
0x2791   :  { %v3298_v4 = vpop.eup %3297 }
0x2792   :  { %3182 = vmatmul.mubr.msk.f32.vlgmr.msra.gmra.mxu1 %vm75_vm1, %v3298_v4 }
0x2852   :  { %v2664_v33 = vpop.f32.mrf.mxu1 }
0x2853   :  { %v2668_v9 = vsel %vm296_vm2, %v2664_v33, -inf }
0x2854   :  { %2669 = vmax.xlane.f32.xlu0 %v2668_v9  ;;  %v3183_v5 = vpop.f32.mrf.mxu1 }
0x28dd   :  { %v2670_v23 = vpop.xlane.xlu0 %2669 }
0x28de   :  { %v2671_v0 = vsub.f32 %v2664_v33, %v2670_v23 }
0x28e0   :  { %v2672_v24 = vmul.f32 1.442695, %v2671_v0 }
0x28e2   :  { %3299 = vpow2.f32 %v2672_v24 }
0x28ef   :  { %v3300_v7 = vpop.eup %3299 }
0x28f0   :  { %v2674_v25 = vsel %vm296_vm2, %v3300_v7, 0.0 }
0x28f1   :  { %2675 = vadd.xlane.f32.xlu1 %v2674_v25 }
0x297a   :  { %v2676_v26 = vpop.xlane.xlu1 %2675 }
0x297b   :  { %3301 = vrcp.f32 %v2676_v26 }
0x2988   :  { %v3302_v27 = vpop.eup %3301 }
0x2989   :  { %v2678_v28 = vmul.f32 %v3302_v27, %v3300_v7 }
0x298b   :  { %v2679_v29 = vmul.f32 %v2678_v28, %v2664_v33 }
0x298d   :  { %3187 = vmatmul.mubr.msk.f32.vlgmr.msra.gmra.mxu0 %vm309_vm4, %v2679_v29 }
0x2a4d   :  { %v2749_v30 = vpop.f32.mrf.mxu0 }
0x2a4e   :  { %v2753_v31 = vadd.f32 %v2749_v30, %v2512_v18 }
0x2a4f   :  { %v3188_v1 = vpop.f32.mrf.mxu0 }
0x2a50   :  { %v2754_v34 = vadd.f32 %v3946_v46, %v2753_v31 }
0x2a52   :  { %3303 = vtanh.f32 %v2754_v34  ;;  %v2875_v35 = vmul.f32 -1.442695, %v2754_v34 }
0x2a54   :  { %3305 = vpow2.f32 %v2875_v35 }
0x2a5f   :  { %v3304_v13 = vpop.eup %3303 }
0x2a60   :  { %2764 = vrot.lane.b32.xlu0 %v3304_v13, %s3402_s27 }
0x2a61   :  { %v3306_v36 = vpop.eup %3305 }
0x2a62   :  { %v2758_v37 = vadd.f32 1.0, %v3306_v36 }
0x2a64   :  { %2787 = vrot.lane.b32.xlu0 %v3871_v19, %s3402_s27  ;;  %3307 = vrcp.f32 %v2758_v37 }
0x2a71   :  { %v3308_v39 = vpop.eup %3307 }
0x2a72   :  { %v2762_v15 = vmul.f32 %v3308_v39, %v3952_v59 }
0x2ad2   :  { %v2765_v14 = vpop.permute.xlu0 %2764 }
0x2ad3   :  { %v2767_v3 = vmul.f32 %v3308_v39, %v2765_v14 }
0x2ad5   :  { %2769 = vrot.lane.b32.xlu1 %v2767_v3, %s3403_s28 }
0x2ad6   :  { %v2788_v6 = vpop.permute.xlu0 %2787 }
0x2ad7   :  { %v2798_v43 = vsel %vm75_vm1, %v3813_v32, %v2788_v6 }
0x2ad9   :  { %2780 = vrot.lane.b32.xlu1 %v3639_v49, %s3402_s27 }
0x2add   :  { %2783 = vrot.lane.b32.xlu1 %v3696_v44, %s3404_s29 }
0x2b47   :  { %v2770_v16 = vpop.permute.xlu1 %2769 }
0x2b48   :  { %v2772_v19 = vadd.f32 %v2770_v16, %v2762_v15 }
0x2b4a   :  { %3309 = vtanh.f32 %v2772_v19 }
0x2b4b   :  { %v2781_v42 = vpop.permute.xlu1 %2780 }
0x2b4c   :  { %v2793_v49 = vsel %vm75_vm1, %v3587_v56, %v2781_v42 }
0x2b4f   :  { %v2784_v41 = vpop.permute.xlu1 %2783 }
0x2b50   :  { %v2795_v44 = vsel %vm2794_vm5, %v2793_v49, %v2784_v41 }
0x2b51   :  { %v2797_v47 = vsel %vm2796_vm6, %v2795_v44, %v3751_v40 }
0x2b57   :  { %v3310_v20 = vpop.eup %3309 }
0x2b58   :  { %2775 = vrot.lane.b32.xlu0 %v3310_v20, %s3402_s27 }
0x2b5c   :  { %2790 = vrot.lane.b32.xlu0 %v3958_v10, %s3404_s29 }
0x2bca   :  { %v2776_v8 = vpop.permute.xlu0 %2775 }
0x2bcb   :  { %v2778_v45 = vmul.f32 %v3308_v39, %v2776_v8 }
0x2bce   :  { %v2791_v11 = vpop.permute.xlu0 %2790 }
0x2bcf   :  { %v2799_v46 = vsel %vm2794_vm5, %v2798_v43, %v2791_v11 }
0x2bd0   :  { %v2800_v48 = vsel %vm2796_vm6, %v2799_v46, %v2778_v45 }
0x2bd1   :  { %v2803_v50 = vcombine.low %v2797_v47, %v2800_v48 }
0x2bd3   :  { %2876 = vst.sshfl [vmem:[#allocation7] sm:$0x33 pattern:$0x76325410] %v2803_v50 }
0x2bd4   :  { %3381 = shalt.err (!%p3378_p0)
}
0x2bd5   :  { %2822 = dma.vmem_to_hbm [thread:$0]  %s2820_s21, 64, %s4011_s6, [#allocation4]  }
0x2bd6   :  { %3394 = dma.done.wait [#allocation4], 64  }
0x2bd7   :  { %3395 = vsyncadd [#allocation4], 4294967232 }
0x2bd8   :  { %2826 = vsyncpa [#allocation3], 1 }
0x2bd9   :  { %2827 = vsyncpa [#allocation6], 1 }
0x2bda   :  { %2828 = vsyncpa [#allocation4], 1 }

</bundles_post_ra>
